<compile_context>
chip_gen: v5e
topology: v5e:2x2
jax: 0.10.0
libtpu: 0.0.40
codegen_flags: <defaults>
</compile_context>

<pallas_src>
import jax
import jax.numpy as jnp
from jax import lax
from jax.experimental import pallas as pl
from jax.experimental.pallas import tpu as pltpu

# Small config (stand-in for cfg): d_batch_size=2, max_length=8,
# src_alphabet_size=32, src_em_size=16, h_units=32, src_pad_id=0.
B, T, V, E, HU = 2, 8, 32, 16, 32
PAD_ID = 0
F32 = jnp.float32


def encoder_kernel(ids_f_ref, ids_b_ref, mask_ref,
                   w_gather_ref, whh_bd_ref, wd_ref, bd_ref,
                   out_ref, hcat_ref):
    """ids_f/ids_b: (T*B, 1) int32 (ids_b already time-reversed and offset by V);
    mask: (T*B, 1) f32; w_gather: (2V, 8HU); whh_bd: (2HU, 8HU) block-diagonal;
    wd: (2HU, HU); bd: (1, HU); out: (T*B, HU); hcat scratch: (T*B, 2HU)."""
    TB = T * B

    # ---- Embedding gather + input projection + gate biases: ONE matmul. ----
    # Each one-hot row has exactly two ones: one in the fwd half of the table
    # (id at time t) and one in the bwd half (id at time T-1-t).
    col = lax.broadcasted_iota(jnp.int32, (TB, 2 * V), 1)
    onehot = jnp.logical_or(col == ids_f_ref[...],
                            col == ids_b_ref[...]).astype(F32)           # (TB, 2V)
    xg = jnp.dot(onehot, w_gather_ref[...],
                 preferred_element_type=F32)                             # (TB, 8HU)

    whh_bd = whh_bd_ref[...]                                             # (2HU, 8HU)

    # ---- Fused fwd+bwd recurrence: ONE (B,2HU)@(2HU,8HU) matmul per step. ----
    # T is static and tiny, so a Python loop == full unroll with static store
    # indices and full scheduler visibility across timesteps.
    h = jnp.zeros((B, 2 * HU), F32)          # [h_fwd | h_bwd]
    c = jnp.zeros((B, 2 * HU), F32)
    for s in range(T):
        gates = xg[s * B:(s + 1) * B, :] + jnp.dot(
            h, whh_bd, preferred_element_type=F32)                       # (B, 8HU)
        # interleaved-by-gate column layout: [i_f,i_b, f_f,f_b, g_f,g_b, o_f,o_b]
        i = jax.nn.sigmoid(gates[:, 0 * HU:2 * HU])
        f = jax.nn.sigmoid(gates[:, 2 * HU:4 * HU])
        g = jnp.tanh(gates[:, 4 * HU:6 * HU])
        o = jax.nn.sigmoid(gates[:, 6 * HU:8 * HU])
        c = f * c + i * g
        h = o * jnp.tanh(c)
        # forward half belongs to time s, backward half to time T-1-s
        hcat_ref[s * B:(s + 1) * B, 0:HU] = h[:, 0:HU]
        hcat_ref[(T - 1 - s) * B:(T - s) * B, HU:2 * HU] = h[:, HU:2 * HU]

    # ---- Dense + tanh + mask epilogue (dropout = identity at inference). ----
    hh = jnp.dot(hcat_ref[...], wd_ref[...],
                 preferred_element_type=F32) + bd_ref[...]               # (TB, HU)
    out_ref[...] = jnp.tanh(hh) * mask_ref[...]


def _interleave_gate_cols(a, b):
    """(R,4HU) x (R,4HU) -> (R,8HU) with columns [i_a,i_b,f_a,f_b,g_a,g_b,o_a,o_b]."""
    r = a.shape[0]
    a4 = a.reshape(r, 4, HU)
    b4 = b.reshape(r, 4, HU)
    return jnp.concatenate([a4, b4], axis=-1).reshape(r, 8 * HU)


@jax.jit
def encoder_forward(x_ids, x_mask, params):
    """x_ids: (B, T) int32 ids; x_mask: (B, T) float32. Returns (B, T, HU) float32."""
    # --- one-time weight preprocessing (pure XLA, outside the kernel) ---
    emb = params['emb']
    wg_f = emb @ params['wih_f'] + params['b_f']       # (V, 4HU), bias folded
    wg_b = emb @ params['wih_b'] + params['b_b']
    zg = jnp.zeros_like(wg_f)
    w_gather = jnp.concatenate([_interleave_gate_cols(wg_f, zg),
                                _interleave_gate_cols(zg, wg_b)], axis=0)    # (2V, 8HU)
    zr = jnp.zeros_like(params['whh_f'])
    whh_bd = jnp.concatenate([_interleave_gate_cols(params['whh_f'], zr),
                              _interleave_gate_cols(zr, params['whh_b'])],
                             axis=0)                                         # (2HU, 8HU)
    # TODO(synk): on v5e, cast w_gather/whh_bd (and in-kernel h/onehot) to bf16
    # with f32 accumulation to cut MXU passes; kept f32 here for exactness.

    # --- time-major inputs; backward ids pre-reversed and offset into the
    #     second half of the gather table ---
    ids_tm = jnp.transpose(x_ids).astype(jnp.int32)            # (T, B)
    mask_tm = jnp.transpose(x_mask).astype(F32)                # (T, B)
    ids_f = ids_tm.reshape(T * B, 1)
    ids_b = ids_tm[::-1].reshape(T * B, 1) + V
    mask_col = mask_tm.reshape(T * B, 1)

    vmem = pl.BlockSpec(memory_space=pltpu.MemorySpace.VMEM)
    out2d = pl.pallas_call(
        encoder_kernel,
        out_shape=jax.ShapeDtypeStruct((T * B, HU), F32),
        in_specs=[vmem] * 7,
        out_specs=vmem,
        scratch_shapes=[pltpu.VMEM((T * B, 2 * HU), F32)],
        # TODO(synk): at realistic vocab/batch sizes (esp. v7x: 64 MiB VMEM,
        # 2 TCs) keep the embedding table in HBM (memory_space=pl.ANY) with a
        # scalar-prefetched gather and add a batch grid with
        # dimension_semantics=("parallel",); unnecessary at these toy sizes.
    )(ids_f, ids_b, mask_col, w_gather, whh_bd, params['wd'], params['bd'])
    return jnp.transpose(out2d.reshape(T, B, HU), (1, 0, 2))   # (B, T, HU)


def make_params(key):
    """Deterministic xavier-uniform weights, zero biases (matches param_init)."""
    def xavier(k, shape):
        fan_in, fan_out = shape[0], shape[1]
        bound = (6.0 / (fan_in + fan_out)) ** 0.5
        return jax.random.uniform(k, shape, jnp.float32, -bound, bound)

    ks = jax.random.split(key, 8)
    emb = jax.random.normal(ks[0], (V, E), jnp.float32) * 0.1
    emb = emb.at[PAD_ID].set(0.0)                        # pad row zeroed (as in forward)
    return dict(
        emb=emb,
        wih_f=xavier(ks[1], (E, 4 * HU)), whh_f=xavier(ks[2], (HU, 4 * HU)),
        b_f=jnp.zeros((1, 4 * HU), jnp.float32),
        wih_b=xavier(ks[3], (E, 4 * HU)), whh_b=xavier(ks[4], (HU, 4 * HU)),
        b_b=jnp.zeros((1, 4 * HU), jnp.float32),
        wd=xavier(ks[5], (2 * HU, HU)), bd=jnp.zeros((1, HU), jnp.float32),
    )


def reference_forward(x_ids, x_mask, p):
    """Pure-JAX reference mirroring the PyTorch module (eval mode)."""
    x_em = p['emb'][x_ids]                               # (B, T, E)
    xs = jnp.transpose(x_em, (1, 0, 2))                  # (T, B, E)

    def lstm(xs_tm, wih, whh, b):
        def step(carry, xt):
            h, c = carry
            g = xt @ wih + h @ whh + b
            i = jax.nn.sigmoid(g[:, :HU]); f = jax.nn.sigmoid(g[:, HU:2 * HU])
            gg = jnp.tanh(g[:, 2 * HU:3 * HU]); o = jax.nn.sigmoid(g[:, 3 * HU:])
            c = f * c + i * gg
            h = o * jnp.tanh(c)
            return (h, c), h
        z = jnp.zeros((xs_tm.shape[1], HU), jnp.float32)
        _, hs = lax.scan(step, (z, z), xs_tm)
        return hs                                        # (T, B, HU)

    hf = lstm(xs, p['wih_f'], p['whh_f'], p['b_f'][0])
    hb = lstm(xs[::-1], p['wih_b'], p['whh_b'], p['b_b'][0])[::-1]
    hcat = jnp.concatenate([hf, hb], -1)
    H = jnp.tanh(hcat @ p['wd'] + p['bd'][0])
    H = H * jnp.transpose(x_mask)[:, :, None]
    return jnp.transpose(H, (1, 0, 2))                   # (B, T, HU)


if __name__ == "__main__":
    key = jax.random.PRNGKey(0)
    k_param, k_ids = jax.random.split(key)
    params = make_params(k_param)

    # Example batch: ids in [1, V), pad positions use PAD_ID and mask 0.
    lengths = jnp.array([T, T - 3], dtype=jnp.int32)
    pos = jnp.arange(T)[None, :]
    x_mask = (pos < lengths[:, None]).astype(jnp.float32)        # (B, T)
    raw_ids = jax.random.randint(k_ids, (B, T), 1, V)
    x_ids = jnp.where(x_mask > 0, raw_ids, PAD_ID).astype(jnp.int32)

    out = jax.block_until_ready(encoder_forward(x_ids, x_mask, params))
    ref = jax.block_until_ready(reference_forward(x_ids, x_mask, params))

    assert out.shape == (B, T, HU), out.shape
    assert jnp.allclose(out, ref, atol=1e-2, rtol=1e-2), float(jnp.max(jnp.abs(out - ref)))
    # TODO(synk): nn.Dropout is treated as identity (inference mode); no RNG dropout mask.
    print("KERNEL_OK")
</pallas_src>

<mosaic_0001>
module attributes {stable_mosaic.version = 11 : i64} {
  func.func @encoder_kernel(%arg0: memref<16x1xi32, #tpu.memory_space<vmem>>, %arg1: memref<16x1xi32, #tpu.memory_space<vmem>>, %arg2: memref<16x1xf32, #tpu.memory_space<vmem>>, %arg3: memref<64x256xf32, #tpu.memory_space<vmem>>, %arg4: memref<64x256xf32, #tpu.memory_space<vmem>>, %arg5: memref<64x32xf32, #tpu.memory_space<vmem>>, %arg6: memref<1x32xf32, #tpu.memory_space<vmem>>, %arg7: memref<16x32xf32, #tpu.memory_space<vmem>>, %arg8: memref<16x64xf32, #tpu.memory_space<vmem>>) attributes {dimension_semantics = [], scalar_prefetch = 0 : i64, scratch_operands = 1 : i64, tpu.core_type = #tpu.core_type<tc>} {
    %0 = tpu.iota {dimensions = array<i32: 1>} : vector<16x64xi32>
    %c0 = arith.constant 0 : index
    %c0_0 = arith.constant 0 : index
    %1 = vector.load %arg0[%c0, %c0_0] : memref<16x1xi32, #tpu.memory_space<vmem>>, vector<16x1xi32>
    %2 = vector.broadcast %1 : vector<16x1xi32> to vector<16x64xi32>
    %3 = arith.cmpi eq, %0, %2 : vector<16x64xi32>
    %c0_1 = arith.constant 0 : index
    %c0_2 = arith.constant 0 : index
    %4 = vector.load %arg1[%c0_1, %c0_2] : memref<16x1xi32, #tpu.memory_space<vmem>>, vector<16x1xi32>
    %5 = vector.broadcast %4 : vector<16x1xi32> to vector<16x64xi32>
    %6 = arith.cmpi eq, %0, %5 : vector<16x64xi32>
    %7 = arith.ori %3, %6 : vector<16x64xi1>
    %8 = arith.extui %7 : vector<16x64xi1> to vector<16x64xi32>
    %9 = arith.sitofp %8 : vector<16x64xi32> to vector<16x64xf32>
    %c0_3 = arith.constant 0 : index
    %c0_4 = arith.constant 0 : index
    %10 = vector.load %arg3[%c0_3, %c0_4] : memref<64x256xf32, #tpu.memory_space<vmem>>, vector<64x256xf32>
    %cst = arith.constant dense<0.000000e+00> : vector<16x256xf32>
    %11 = tpu.matmul %9, %10, %cst {dimension_numbers = #tpu.dot_dimension_numbers<[1], [0], [0], [1], [0, 0, 1, 1], [], []>} : vector<16x64xf32>, vector<64x256xf32>, vector<16x256xf32> -> vector<16x256xf32>
    %c0_5 = arith.constant 0 : index
    %c0_6 = arith.constant 0 : index
    %12 = vector.load %arg4[%c0_5, %c0_6] : memref<64x256xf32, #tpu.memory_space<vmem>>, vector<64x256xf32>
    %cst_7 = arith.constant 0.000000e+00 : f32
    %13 = vector.broadcast %cst_7 : f32 to vector<2x64xf32>
    %cst_8 = arith.constant 0.000000e+00 : f32
    %14 = vector.broadcast %cst_8 : f32 to vector<2x64xf32>
    %15 = vector.extract_strided_slice %11 {offsets = [0, 0], sizes = [2, 256], strides = [1, 1]} : vector<16x256xf32> to vector<2x256xf32>
    %cst_9 = arith.constant dense<0.000000e+00> : vector<2x256xf32>
    %16 = tpu.matmul %13, %12, %cst_9 {dimension_numbers = #tpu.dot_dimension_numbers<[1], [0], [0], [1], [0, 0, 1, 1], [], []>} : vector<2x64xf32>, vector<64x256xf32>, vector<2x256xf32> -> vector<2x256xf32>
    %17 = arith.addf %15, %16 : vector<2x256xf32>
    %18 = vector.extract_strided_slice %17 {offsets = [0, 0], sizes = [2, 64], strides = [1, 1]} : vector<2x256xf32> to vector<2x64xf32>
    %19 = arith.negf %18 : vector<2x64xf32>
    %20 = math.exp %19 : vector<2x64xf32>
    %cst_10 = arith.constant 1.000000e+00 : f32
    %21 = vector.broadcast %cst_10 : f32 to vector<2x64xf32>
    %22 = arith.addf %21, %20 : vector<2x64xf32>
    %23 = arith.divf %21, %22 : vector<2x64xf32>
    %24 = vector.extract_strided_slice %17 {offsets = [0, 64], sizes = [2, 64], strides = [1, 1]} : vector<2x256xf32> to vector<2x64xf32>
    %25 = arith.negf %24 : vector<2x64xf32>
    %26 = math.exp %25 : vector<2x64xf32>
    %cst_11 = arith.constant 1.000000e+00 : f32
    %27 = vector.broadcast %cst_11 : f32 to vector<2x64xf32>
    %28 = arith.addf %27, %26 : vector<2x64xf32>
    %29 = arith.divf %27, %28 : vector<2x64xf32>
    %30 = vector.extract_strided_slice %17 {offsets = [0, 128], sizes = [2, 64], strides = [1, 1]} : vector<2x256xf32> to vector<2x64xf32>
    %31 = math.tanh %30 : vector<2x64xf32>
    %32 = vector.extract_strided_slice %17 {offsets = [0, 192], sizes = [2, 64], strides = [1, 1]} : vector<2x256xf32> to vector<2x64xf32>
    %33 = arith.negf %32 : vector<2x64xf32>
    %34 = math.exp %33 : vector<2x64xf32>
    %cst_12 = arith.constant 1.000000e+00 : f32
    %35 = vector.broadcast %cst_12 : f32 to vector<2x64xf32>
    %36 = arith.addf %35, %34 : vector<2x64xf32>
    %37 = arith.divf %35, %36 : vector<2x64xf32>
    %38 = arith.mulf %29, %14 : vector<2x64xf32>
    %39 = arith.mulf %23, %31 : vector<2x64xf32>
    %40 = arith.addf %38, %39 : vector<2x64xf32>
    %41 = math.tanh %40 : vector<2x64xf32>
    %42 = arith.mulf %37, %41 : vector<2x64xf32>
    %43 = vector.extract_strided_slice %42 {offsets = [0, 0], sizes = [2, 32], strides = [1, 1]} : vector<2x64xf32> to vector<2x32xf32>
    %c0_13 = arith.constant 0 : index
    %c0_14 = arith.constant 0 : index
    %44 = vector.load %arg8[%c0_13, %c0_14] : memref<16x64xf32, #tpu.memory_space<vmem>>, vector<2x32xf32>
    tpu.vector_store %arg8[%c0_13, %c0_14], %43 {strides = array<i32>} : memref<16x64xf32, #tpu.memory_space<vmem>>, vector<2x32xf32>,
    %45 = vector.extract_strided_slice %42 {offsets = [0, 32], sizes = [2, 32], strides = [1, 1]} : vector<2x64xf32> to vector<2x32xf32>
    %c14 = arith.constant 14 : index
    %c32 = arith.constant 32 : index
    %46 = vector.load %arg8[%c14, %c32] : memref<16x64xf32, #tpu.memory_space<vmem>>, vector<2x32xf32>
    tpu.vector_store %arg8[%c14, %c32], %45 {strides = array<i32>} : memref<16x64xf32, #tpu.memory_space<vmem>>, vector<2x32xf32>,
    %47 = vector.extract_strided_slice %11 {offsets = [2, 0], sizes = [2, 256], strides = [1, 1]} : vector<16x256xf32> to vector<2x256xf32>
    %cst_15 = arith.constant dense<0.000000e+00> : vector<2x256xf32>
    %48 = tpu.matmul %42, %12, %cst_15 {dimension_numbers = #tpu.dot_dimension_numbers<[1], [0], [0], [1], [0, 0, 1, 1], [], []>} : vector<2x64xf32>, vector<64x256xf32>, vector<2x256xf32> -> vector<2x256xf32>
    %49 = arith.addf %47, %48 : vector<2x256xf32>
    %50 = vector.extract_strided_slice %49 {offsets = [0, 0], sizes = [2, 64], strides = [1, 1]} : vector<2x256xf32> to vector<2x64xf32>
    %51 = arith.negf %50 : vector<2x64xf32>
    %52 = math.exp %51 : vector<2x64xf32>
    %cst_16 = arith.constant 1.000000e+00 : f32
    %53 = vector.broadcast %cst_16 : f32 to vector<2x64xf32>
    %54 = arith.addf %53, %52 : vector<2x64xf32>
    %55 = arith.divf %53, %54 : vector<2x64xf32>
    %56 = vector.extract_strided_slice %49 {offsets = [0, 64], sizes = [2, 64], strides = [1, 1]} : vector<2x256xf32> to vector<2x64xf32>
    %57 = arith.negf %56 : vector<2x64xf32>
    %58 = math.exp %57 : vector<2x64xf32>
    %cst_17 = arith.constant 1.000000e+00 : f32
    %59 = vector.broadcast %cst_17 : f32 to vector<2x64xf32>
    %60 = arith.addf %59, %58 : vector<2x64xf32>
    %61 = arith.divf %59, %60 : vector<2x64xf32>
    %62 = vector.extract_strided_slice %49 {offsets = [0, 128], sizes = [2, 64], strides = [1, 1]} : vector<2x256xf32> to vector<2x64xf32>
    %63 = math.tanh %62 : vector<2x64xf32>
    %64 = vector.extract_strided_slice %49 {offsets = [0, 192], sizes = [2, 64], strides = [1, 1]} : vector<2x256xf32> to vector<2x64xf32>
    %65 = arith.negf %64 : vector<2x64xf32>
    %66 = math.exp %65 : vector<2x64xf32>
    %cst_18 = arith.constant 1.000000e+00 : f32
    %67 = vector.broadcast %cst_18 : f32 to vector<2x64xf32>
    %68 = arith.addf %67, %66 : vector<2x64xf32>
    %69 = arith.divf %67, %68 : vector<2x64xf32>
    %70 = arith.mulf %61, %40 : vector<2x64xf32>
    %71 = arith.mulf %55, %63 : vector<2x64xf32>
    %72 = arith.addf %70, %71 : vector<2x64xf32>
    %73 = math.tanh %72 : vector<2x64xf32>
    %74 = arith.mulf %69, %73 : vector<2x64xf32>
    %75 = vector.extract_strided_slice %74 {offsets = [0, 0], sizes = [2, 32], strides = [1, 1]} : vector<2x64xf32> to vector<2x32xf32>
    %c2 = arith.constant 2 : index
    %c0_19 = arith.constant 0 : index
    %76 = vector.load %arg8[%c2, %c0_19] : memref<16x64xf32, #tpu.memory_space<vmem>>, vector<2x32xf32>
    tpu.vector_store %arg8[%c2, %c0_19], %75 {strides = array<i32>} : memref<16x64xf32, #tpu.memory_space<vmem>>, vector<2x32xf32>,
    %77 = vector.extract_strided_slice %74 {offsets = [0, 32], sizes = [2, 32], strides = [1, 1]} : vector<2x64xf32> to vector<2x32xf32>
    %c12 = arith.constant 12 : index
    %c32_20 = arith.constant 32 : index
    %78 = vector.load %arg8[%c12, %c32_20] : memref<16x64xf32, #tpu.memory_space<vmem>>, vector<2x32xf32>
    tpu.vector_store %arg8[%c12, %c32_20], %77 {strides = array<i32>} : memref<16x64xf32, #tpu.memory_space<vmem>>, vector<2x32xf32>,
    %79 = vector.extract_strided_slice %11 {offsets = [4, 0], sizes = [2, 256], strides = [1, 1]} : vector<16x256xf32> to vector<2x256xf32>
    %cst_21 = arith.constant dense<0.000000e+00> : vector<2x256xf32>
    %80 = tpu.matmul %74, %12, %cst_21 {dimension_numbers = #tpu.dot_dimension_numbers<[1], [0], [0], [1], [0, 0, 1, 1], [], []>} : vector<2x64xf32>, vector<64x256xf32>, vector<2x256xf32> -> vector<2x256xf32>
    %81 = arith.addf %79, %80 : vector<2x256xf32>
    %82 = vector.extract_strided_slice %81 {offsets = [0, 0], sizes = [2, 64], strides = [1, 1]} : vector<2x256xf32> to vector<2x64xf32>
    %83 = arith.negf %82 : vector<2x64xf32>
    %84 = math.exp %83 : vector<2x64xf32>
    %cst_22 = arith.constant 1.000000e+00 : f32
    %85 = vector.broadcast %cst_22 : f32 to vector<2x64xf32>
    %86 = arith.addf %85, %84 : vector<2x64xf32>
    %87 = arith.divf %85, %86 : vector<2x64xf32>
    %88 = vector.extract_strided_slice %81 {offsets = [0, 64], sizes = [2, 64], strides = [1, 1]} : vector<2x256xf32> to vector<2x64xf32>
    %89 = arith.negf %88 : vector<2x64xf32>
    %90 = math.exp %89 : vector<2x64xf32>
    %cst_23 = arith.constant 1.000000e+00 : f32
    %91 = vector.broadcast %cst_23 : f32 to vector<2x64xf32>
    %92 = arith.addf %91, %90 : vector<2x64xf32>
    %93 = arith.divf %91, %92 : vector<2x64xf32>
    %94 = vector.extract_strided_slice %81 {offsets = [0, 128], sizes = [2, 64], strides = [1, 1]} : vector<2x256xf32> to vector<2x64xf32>
    %95 = math.tanh %94 : vector<2x64xf32>
    %96 = vector.extract_strided_slice %81 {offsets = [0, 192], sizes = [2, 64], strides = [1, 1]} : vector<2x256xf32> to vector<2x64xf32>
    %97 = arith.negf %96 : vector<2x64xf32>
    %98 = math.exp %97 : vector<2x64xf32>
    %cst_24 = arith.constant 1.000000e+00 : f32
    %99 = vector.broadcast %cst_24 : f32 to vector<2x64xf32>
    %100 = arith.addf %99, %98 : vector<2x64xf32>
    %101 = arith.divf %99, %100 : vector<2x64xf32>
    %102 = arith.mulf %93, %72 : vector<2x64xf32>
    %103 = arith.mulf %87, %95 : vector<2x64xf32>
    %104 = arith.addf %102, %103 : vector<2x64xf32>
    %105 = math.tanh %104 : vector<2x64xf32>
    %106 = arith.mulf %101, %105 : vector<2x64xf32>
    %107 = vector.extract_strided_slice %106 {offsets = [0, 0], sizes = [2, 32], strides = [1, 1]} : vector<2x64xf32> to vector<2x32xf32>
    %c4 = arith.constant 4 : index
    %c0_25 = arith.constant 0 : index
    %108 = vector.load %arg8[%c4, %c0_25] : memref<16x64xf32, #tpu.memory_space<vmem>>, vector<2x32xf32>
    tpu.vector_store %arg8[%c4, %c0_25], %107 {strides = array<i32>} : memref<16x64xf32, #tpu.memory_space<vmem>>, vector<2x32xf32>,
    %109 = vector.extract_strided_slice %106 {offsets = [0, 32], sizes = [2, 32], strides = [1, 1]} : vector<2x64xf32> to vector<2x32xf32>
    %c10 = arith.constant 10 : index
    %c32_26 = arith.constant 32 : index
    %110 = vector.load %arg8[%c10, %c32_26] : memref<16x64xf32, #tpu.memory_space<vmem>>, vector<2x32xf32>
    tpu.vector_store %arg8[%c10, %c32_26], %109 {strides = array<i32>} : memref<16x64xf32, #tpu.memory_space<vmem>>, vector<2x32xf32>,
    %111 = vector.extract_strided_slice %11 {offsets = [6, 0], sizes = [2, 256], strides = [1, 1]} : vector<16x256xf32> to vector<2x256xf32>
    %cst_27 = arith.constant dense<0.000000e+00> : vector<2x256xf32>
    %112 = tpu.matmul %106, %12, %cst_27 {dimension_numbers = #tpu.dot_dimension_numbers<[1], [0], [0], [1], [0, 0, 1, 1], [], []>} : vector<2x64xf32>, vector<64x256xf32>, vector<2x256xf32> -> vector<2x256xf32>
    %113 = arith.addf %111, %112 : vector<2x256xf32>
    %114 = vector.extract_strided_slice %113 {offsets = [0, 0], sizes = [2, 64], strides = [1, 1]} : vector<2x256xf32> to vector<2x64xf32>
    %115 = arith.negf %114 : vector<2x64xf32>
    %116 = math.exp %115 : vector<2x64xf32>
    %cst_28 = arith.constant 1.000000e+00 : f32
    %117 = vector.broadcast %cst_28 : f32 to vector<2x64xf32>
    %118 = arith.addf %117, %116 : vector<2x64xf32>
    %119 = arith.divf %117, %118 : vector<2x64xf32>
    %120 = vector.extract_strided_slice %113 {offsets = [0, 64], sizes = [2, 64], strides = [1, 1]} : vector<2x256xf32> to vector<2x64xf32>
    %121 = arith.negf %120 : vector<2x64xf32>
    %122 = math.exp %121 : vector<2x64xf32>
    %cst_29 = arith.constant 1.000000e+00 : f32
    %123 = vector.broadcast %cst_29 : f32 to vector<2x64xf32>
    %124 = arith.addf %123, %122 : vector<2x64xf32>
    %125 = arith.divf %123, %124 : vector<2x64xf32>
    %126 = vector.extract_strided_slice %113 {offsets = [0, 128], sizes = [2, 64], strides = [1, 1]} : vector<2x256xf32> to vector<2x64xf32>
    %127 = math.tanh %126 : vector<2x64xf32>
    %128 = vector.extract_strided_slice %113 {offsets = [0, 192], sizes = [2, 64], strides = [1, 1]} : vector<2x256xf32> to vector<2x64xf32>
    %129 = arith.negf %128 : vector<2x64xf32>
    %130 = math.exp %129 : vector<2x64xf32>
    %cst_30 = arith.constant 1.000000e+00 : f32
    %131 = vector.broadcast %cst_30 : f32 to vector<2x64xf32>
    %132 = arith.addf %131, %130 : vector<2x64xf32>
    %133 = arith.divf %131, %132 : vector<2x64xf32>
    %134 = arith.mulf %125, %104 : vector<2x64xf32>
    %135 = arith.mulf %119, %127 : vector<2x64xf32>
    %136 = arith.addf %134, %135 : vector<2x64xf32>
    %137 = math.tanh %136 : vector<2x64xf32>
    %138 = arith.mulf %133, %137 : vector<2x64xf32>
    %139 = vector.extract_strided_slice %138 {offsets = [0, 0], sizes = [2, 32], strides = [1, 1]} : vector<2x64xf32> to vector<2x32xf32>
    %c6 = arith.constant 6 : index
    %c0_31 = arith.constant 0 : index
    %140 = vector.load %arg8[%c6, %c0_31] : memref<16x64xf32, #tpu.memory_space<vmem>>, vector<2x32xf32>
    tpu.vector_store %arg8[%c6, %c0_31], %139 {strides = array<i32>} : memref<16x64xf32, #tpu.memory_space<vmem>>, vector<2x32xf32>,
    %141 = vector.extract_strided_slice %138 {offsets = [0, 32], sizes = [2, 32], strides = [1, 1]} : vector<2x64xf32> to vector<2x32xf32>
    %c8 = arith.constant 8 : index
    %c32_32 = arith.constant 32 : index
    %142 = vector.load %arg8[%c8, %c32_32] : memref<16x64xf32, #tpu.memory_space<vmem>>, vector<2x32xf32>
    tpu.vector_store %arg8[%c8, %c32_32], %141 {strides = array<i32>} : memref<16x64xf32, #tpu.memory_space<vmem>>, vector<2x32xf32>,
    %143 = vector.extract_strided_slice %11 {offsets = [8, 0], sizes = [2, 256], strides = [1, 1]} : vector<16x256xf32> to vector<2x256xf32>
    %cst_33 = arith.constant dense<0.000000e+00> : vector<2x256xf32>
    %144 = tpu.matmul %138, %12, %cst_33 {dimension_numbers = #tpu.dot_dimension_numbers<[1], [0], [0], [1], [0, 0, 1, 1], [], []>} : vector<2x64xf32>, vector<64x256xf32>, vector<2x256xf32> -> vector<2x256xf32>
    %145 = arith.addf %143, %144 : vector<2x256xf32>
    %146 = vector.extract_strided_slice %145 {offsets = [0, 0], sizes = [2, 64], strides = [1, 1]} : vector<2x256xf32> to vector<2x64xf32>
    %147 = arith.negf %146 : vector<2x64xf32>
    %148 = math.exp %147 : vector<2x64xf32>
    %cst_34 = arith.constant 1.000000e+00 : f32
    %149 = vector.broadcast %cst_34 : f32 to vector<2x64xf32>
    %150 = arith.addf %149, %148 : vector<2x64xf32>
    %151 = arith.divf %149, %150 : vector<2x64xf32>
    %152 = vector.extract_strided_slice %145 {offsets = [0, 64], sizes = [2, 64], strides = [1, 1]} : vector<2x256xf32> to vector<2x64xf32>
    %153 = arith.negf %152 : vector<2x64xf32>
    %154 = math.exp %153 : vector<2x64xf32>
    %cst_35 = arith.constant 1.000000e+00 : f32
    %155 = vector.broadcast %cst_35 : f32 to vector<2x64xf32>
    %156 = arith.addf %155, %154 : vector<2x64xf32>
    %157 = arith.divf %155, %156 : vector<2x64xf32>
    %158 = vector.extract_strided_slice %145 {offsets = [0, 128], sizes = [2, 64], strides = [1, 1]} : vector<2x256xf32> to vector<2x64xf32>
    %159 = math.tanh %158 : vector<2x64xf32>
    %160 = vector.extract_strided_slice %145 {offsets = [0, 192], sizes = [2, 64], strides = [1, 1]} : vector<2x256xf32> to vector<2x64xf32>
    %161 = arith.negf %160 : vector<2x64xf32>
    %162 = math.exp %161 : vector<2x64xf32>
    %cst_36 = arith.constant 1.000000e+00 : f32
    %163 = vector.broadcast %cst_36 : f32 to vector<2x64xf32>
    %164 = arith.addf %163, %162 : vector<2x64xf32>
    %165 = arith.divf %163, %164 : vector<2x64xf32>
    %166 = arith.mulf %157, %136 : vector<2x64xf32>
    %167 = arith.mulf %151, %159 : vector<2x64xf32>
    %168 = arith.addf %166, %167 : vector<2x64xf32>
    %169 = math.tanh %168 : vector<2x64xf32>
    %170 = arith.mulf %165, %169 : vector<2x64xf32>
    %171 = vector.extract_strided_slice %170 {offsets = [0, 0], sizes = [2, 32], strides = [1, 1]} : vector<2x64xf32> to vector<2x32xf32>
    %c8_37 = arith.constant 8 : index
    %c0_38 = arith.constant 0 : index
    %172 = vector.load %arg8[%c8_37, %c0_38] : memref<16x64xf32, #tpu.memory_space<vmem>>, vector<2x32xf32>
    tpu.vector_store %arg8[%c8_37, %c0_38], %171 {strides = array<i32>} : memref<16x64xf32, #tpu.memory_space<vmem>>, vector<2x32xf32>,
    %173 = vector.extract_strided_slice %170 {offsets = [0, 32], sizes = [2, 32], strides = [1, 1]} : vector<2x64xf32> to vector<2x32xf32>
    %c6_39 = arith.constant 6 : index
    %c32_40 = arith.constant 32 : index
    %174 = vector.load %arg8[%c6_39, %c32_40] : memref<16x64xf32, #tpu.memory_space<vmem>>, vector<2x32xf32>
    tpu.vector_store %arg8[%c6_39, %c32_40], %173 {strides = array<i32>} : memref<16x64xf32, #tpu.memory_space<vmem>>, vector<2x32xf32>,
    %175 = vector.extract_strided_slice %11 {offsets = [10, 0], sizes = [2, 256], strides = [1, 1]} : vector<16x256xf32> to vector<2x256xf32>
    %cst_41 = arith.constant dense<0.000000e+00> : vector<2x256xf32>
    %176 = tpu.matmul %170, %12, %cst_41 {dimension_numbers = #tpu.dot_dimension_numbers<[1], [0], [0], [1], [0, 0, 1, 1], [], []>} : vector<2x64xf32>, vector<64x256xf32>, vector<2x256xf32> -> vector<2x256xf32>
    %177 = arith.addf %175, %176 : vector<2x256xf32>
    %178 = vector.extract_strided_slice %177 {offsets = [0, 0], sizes = [2, 64], strides = [1, 1]} : vector<2x256xf32> to vector<2x64xf32>
    %179 = arith.negf %178 : vector<2x64xf32>
    %180 = math.exp %179 : vector<2x64xf32>
    %cst_42 = arith.constant 1.000000e+00 : f32
    %181 = vector.broadcast %cst_42 : f32 to vector<2x64xf32>
    %182 = arith.addf %181, %180 : vector<2x64xf32>
    %183 = arith.divf %181, %182 : vector<2x64xf32>
    %184 = vector.extract_strided_slice %177 {offsets = [0, 64], sizes = [2, 64], strides = [1, 1]} : vector<2x256xf32> to vector<2x64xf32>
    %185 = arith.negf %184 : vector<2x64xf32>
    %186 = math.exp %185 : vector<2x64xf32>
    %cst_43 = arith.constant 1.000000e+00 : f32
    %187 = vector.broadcast %cst_43 : f32 to vector<2x64xf32>
    %188 = arith.addf %187, %186 : vector<2x64xf32>
    %189 = arith.divf %187, %188 : vector<2x64xf32>
    %190 = vector.extract_strided_slice %177 {offsets = [0, 128], sizes = [2, 64], strides = [1, 1]} : vector<2x256xf32> to vector<2x64xf32>
    %191 = math.tanh %190 : vector<2x64xf32>
    %192 = vector.extract_strided_slice %177 {offsets = [0, 192], sizes = [2, 64], strides = [1, 1]} : vector<2x256xf32> to vector<2x64xf32>
    %193 = arith.negf %192 : vector<2x64xf32>
    %194 = math.exp %193 : vector<2x64xf32>
    %cst_44 = arith.constant 1.000000e+00 : f32
    %195 = vector.broadcast %cst_44 : f32 to vector<2x64xf32>
    %196 = arith.addf %195, %194 : vector<2x64xf32>
    %197 = arith.divf %195, %196 : vector<2x64xf32>
    %198 = arith.mulf %189, %168 : vector<2x64xf32>
    %199 = arith.mulf %183, %191 : vector<2x64xf32>
    %200 = arith.addf %198, %199 : vector<2x64xf32>
    %201 = math.tanh %200 : vector<2x64xf32>
    %202 = arith.mulf %197, %201 : vector<2x64xf32>
    %203 = vector.extract_strided_slice %202 {offsets = [0, 0], sizes = [2, 32], strides = [1, 1]} : vector<2x64xf32> to vector<2x32xf32>
    %c10_45 = arith.constant 10 : index
    %c0_46 = arith.constant 0 : index
    %204 = vector.load %arg8[%c10_45, %c0_46] : memref<16x64xf32, #tpu.memory_space<vmem>>, vector<2x32xf32>
    tpu.vector_store %arg8[%c10_45, %c0_46], %203 {strides = array<i32>} : memref<16x64xf32, #tpu.memory_space<vmem>>, vector<2x32xf32>,
    %205 = vector.extract_strided_slice %202 {offsets = [0, 32], sizes = [2, 32], strides = [1, 1]} : vector<2x64xf32> to vector<2x32xf32>
    %c4_47 = arith.constant 4 : index
    %c32_48 = arith.constant 32 : index
    %206 = vector.load %arg8[%c4_47, %c32_48] : memref<16x64xf32, #tpu.memory_space<vmem>>, vector<2x32xf32>
    tpu.vector_store %arg8[%c4_47, %c32_48], %205 {strides = array<i32>} : memref<16x64xf32, #tpu.memory_space<vmem>>, vector<2x32xf32>,
    %207 = vector.extract_strided_slice %11 {offsets = [12, 0], sizes = [2, 256], strides = [1, 1]} : vector<16x256xf32> to vector<2x256xf32>
    %cst_49 = arith.constant dense<0.000000e+00> : vector<2x256xf32>
    %208 = tpu.matmul %202, %12, %cst_49 {dimension_numbers = #tpu.dot_dimension_numbers<[1], [0], [0], [1], [0, 0, 1, 1], [], []>} : vector<2x64xf32>, vector<64x256xf32>, vector<2x256xf32> -> vector<2x256xf32>
    %209 = arith.addf %207, %208 : vector<2x256xf32>
    %210 = vector.extract_strided_slice %209 {offsets = [0, 0], sizes = [2, 64], strides = [1, 1]} : vector<2x256xf32> to vector<2x64xf32>
    %211 = arith.negf %210 : vector<2x64xf32>
    %212 = math.exp %211 : vector<2x64xf32>
    %cst_50 = arith.constant 1.000000e+00 : f32
    %213 = vector.broadcast %cst_50 : f32 to vector<2x64xf32>
    %214 = arith.addf %213, %212 : vector<2x64xf32>
    %215 = arith.divf %213, %214 : vector<2x64xf32>
    %216 = vector.extract_strided_slice %209 {offsets = [0, 64], sizes = [2, 64], strides = [1, 1]} : vector<2x256xf32> to vector<2x64xf32>
    %217 = arith.negf %216 : vector<2x64xf32>
    %218 = math.exp %217 : vector<2x64xf32>
    %cst_51 = arith.constant 1.000000e+00 : f32
    %219 = vector.broadcast %cst_51 : f32 to vector<2x64xf32>
    %220 = arith.addf %219, %218 : vector<2x64xf32>
    %221 = arith.divf %219, %220 : vector<2x64xf32>
    %222 = vector.extract_strided_slice %209 {offsets = [0, 128], sizes = [2, 64], strides = [1, 1]} : vector<2x256xf32> to vector<2x64xf32>
    %223 = math.tanh %222 : vector<2x64xf32>
    %224 = vector.extract_strided_slice %209 {offsets = [0, 192], sizes = [2, 64], strides = [1, 1]} : vector<2x256xf32> to vector<2x64xf32>
    %225 = arith.negf %224 : vector<2x64xf32>
    %226 = math.exp %225 : vector<2x64xf32>
    %cst_52 = arith.constant 1.000000e+00 : f32
    %227 = vector.broadcast %cst_52 : f32 to vector<2x64xf32>
    %228 = arith.addf %227, %226 : vector<2x64xf32>
    %229 = arith.divf %227, %228 : vector<2x64xf32>
    %230 = arith.mulf %221, %200 : vector<2x64xf32>
    %231 = arith.mulf %215, %223 : vector<2x64xf32>
    %232 = arith.addf %230, %231 : vector<2x64xf32>
    %233 = math.tanh %232 : vector<2x64xf32>
    %234 = arith.mulf %229, %233 : vector<2x64xf32>
    %235 = vector.extract_strided_slice %234 {offsets = [0, 0], sizes = [2, 32], strides = [1, 1]} : vector<2x64xf32> to vector<2x32xf32>
    %c12_53 = arith.constant 12 : index
    %c0_54 = arith.constant 0 : index
    %236 = vector.load %arg8[%c12_53, %c0_54] : memref<16x64xf32, #tpu.memory_space<vmem>>, vector<2x32xf32>
    tpu.vector_store %arg8[%c12_53, %c0_54], %235 {strides = array<i32>} : memref<16x64xf32, #tpu.memory_space<vmem>>, vector<2x32xf32>,
    %237 = vector.extract_strided_slice %234 {offsets = [0, 32], sizes = [2, 32], strides = [1, 1]} : vector<2x64xf32> to vector<2x32xf32>
    %c2_55 = arith.constant 2 : index
    %c32_56 = arith.constant 32 : index
    %238 = vector.load %arg8[%c2_55, %c32_56] : memref<16x64xf32, #tpu.memory_space<vmem>>, vector<2x32xf32>
    tpu.vector_store %arg8[%c2_55, %c32_56], %237 {strides = array<i32>} : memref<16x64xf32, #tpu.memory_space<vmem>>, vector<2x32xf32>,
    %239 = vector.extract_strided_slice %11 {offsets = [14, 0], sizes = [2, 256], strides = [1, 1]} : vector<16x256xf32> to vector<2x256xf32>
    %cst_57 = arith.constant dense<0.000000e+00> : vector<2x256xf32>
    %240 = tpu.matmul %234, %12, %cst_57 {dimension_numbers = #tpu.dot_dimension_numbers<[1], [0], [0], [1], [0, 0, 1, 1], [], []>} : vector<2x64xf32>, vector<64x256xf32>, vector<2x256xf32> -> vector<2x256xf32>
    %241 = arith.addf %239, %240 : vector<2x256xf32>
    %242 = vector.extract_strided_slice %241 {offsets = [0, 0], sizes = [2, 64], strides = [1, 1]} : vector<2x256xf32> to vector<2x64xf32>
    %243 = arith.negf %242 : vector<2x64xf32>
    %244 = math.exp %243 : vector<2x64xf32>
    %cst_58 = arith.constant 1.000000e+00 : f32
    %245 = vector.broadcast %cst_58 : f32 to vector<2x64xf32>
    %246 = arith.addf %245, %244 : vector<2x64xf32>
    %247 = arith.divf %245, %246 : vector<2x64xf32>
    %248 = vector.extract_strided_slice %241 {offsets = [0, 64], sizes = [2, 64], strides = [1, 1]} : vector<2x256xf32> to vector<2x64xf32>
    %249 = arith.negf %248 : vector<2x64xf32>
    %250 = math.exp %249 : vector<2x64xf32>
    %cst_59 = arith.constant 1.000000e+00 : f32
    %251 = vector.broadcast %cst_59 : f32 to vector<2x64xf32>
    %252 = arith.addf %251, %250 : vector<2x64xf32>
    %253 = arith.divf %251, %252 : vector<2x64xf32>
    %254 = vector.extract_strided_slice %241 {offsets = [0, 128], sizes = [2, 64], strides = [1, 1]} : vector<2x256xf32> to vector<2x64xf32>
    %255 = math.tanh %254 : vector<2x64xf32>
    %256 = vector.extract_strided_slice %241 {offsets = [0, 192], sizes = [2, 64], strides = [1, 1]} : vector<2x256xf32> to vector<2x64xf32>
    %257 = arith.negf %256 : vector<2x64xf32>
    %258 = math.exp %257 : vector<2x64xf32>
    %cst_60 = arith.constant 1.000000e+00 : f32
    %259 = vector.broadcast %cst_60 : f32 to vector<2x64xf32>
    %260 = arith.addf %259, %258 : vector<2x64xf32>
    %261 = arith.divf %259, %260 : vector<2x64xf32>
    %262 = arith.mulf %253, %232 : vector<2x64xf32>
    %263 = arith.mulf %247, %255 : vector<2x64xf32>
    %264 = arith.addf %262, %263 : vector<2x64xf32>
    %265 = math.tanh %264 : vector<2x64xf32>
    %266 = arith.mulf %261, %265 : vector<2x64xf32>
    %267 = vector.extract_strided_slice %266 {offsets = [0, 0], sizes = [2, 32], strides = [1, 1]} : vector<2x64xf32> to vector<2x32xf32>
    %c14_61 = arith.constant 14 : index
    %c0_62 = arith.constant 0 : index
    %268 = vector.load %arg8[%c14_61, %c0_62] : memref<16x64xf32, #tpu.memory_space<vmem>>, vector<2x32xf32>
    tpu.vector_store %arg8[%c14_61, %c0_62], %267 {strides = array<i32>} : memref<16x64xf32, #tpu.memory_space<vmem>>, vector<2x32xf32>,
    %269 = vector.extract_strided_slice %266 {offsets = [0, 32], sizes = [2, 32], strides = [1, 1]} : vector<2x64xf32> to vector<2x32xf32>
    %c0_63 = arith.constant 0 : index
    %c32_64 = arith.constant 32 : index
    %270 = vector.load %arg8[%c0_63, %c32_64] : memref<16x64xf32, #tpu.memory_space<vmem>>, vector<2x32xf32>
    tpu.vector_store %arg8[%c0_63, %c32_64], %269 {strides = array<i32>} : memref<16x64xf32, #tpu.memory_space<vmem>>, vector<2x32xf32>,
    %c0_65 = arith.constant 0 : index
    %c0_66 = arith.constant 0 : index
    %271 = vector.load %arg8[%c0_65, %c0_66] : memref<16x64xf32, #tpu.memory_space<vmem>>, vector<16x64xf32>
    %c0_67 = arith.constant 0 : index
    %c0_68 = arith.constant 0 : index
    %272 = vector.load %arg5[%c0_67, %c0_68] : memref<64x32xf32, #tpu.memory_space<vmem>>, vector<64x32xf32>
    %cst_69 = arith.constant dense<0.000000e+00> : vector<16x32xf32>
    %273 = tpu.matmul %271, %272, %cst_69 {dimension_numbers = #tpu.dot_dimension_numbers<[1], [0], [0], [1], [0, 0, 1, 1], [], []>} : vector<16x64xf32>, vector<64x32xf32>, vector<16x32xf32> -> vector<16x32xf32>
    %c0_70 = arith.constant 0 : index
    %c0_71 = arith.constant 0 : index
    %274 = vector.load %arg6[%c0_70, %c0_71] : memref<1x32xf32, #tpu.memory_space<vmem>>, vector<1x32xf32>
    %275 = vector.broadcast %274 : vector<1x32xf32> to vector<16x32xf32>
    %276 = arith.addf %273, %275 : vector<16x32xf32>
    %277 = math.tanh %276 : vector<16x32xf32>
    %c0_72 = arith.constant 0 : index
    %c0_73 = arith.constant 0 : index
    %278 = vector.load %arg2[%c0_72, %c0_73] : memref<16x1xf32, #tpu.memory_space<vmem>>, vector<16x1xf32>
    %279 = vector.broadcast %278 : vector<16x1xf32> to vector<16x32xf32>
    %280 = arith.mulf %277, %279 : vector<16x32xf32>
    %c0_74 = arith.constant 0 : index
    %c0_75 = arith.constant 0 : index
    %281 = vector.load %arg7[%c0_74, %c0_75] : memref<16x32xf32, #tpu.memory_space<vmem>>, vector<16x32xf32>
    tpu.vector_store %arg7[%c0_74, %c0_75], %280 {strides = array<i32>} : memref<16x32xf32, #tpu.memory_space<vmem>>, vector<16x32xf32>,
    return
  }
}

</mosaic_0001>

<bundles_post_ra>
// kernel: encoder_forward.1
= control target key start
LH: loop header
LB: loop body
LE: loop exit
PB: predicated region body
PF: predicated region fallthrough
CT: control target
= control target key end

     0   :  { %v1215_v0 = vmov 0   ;;  %v1216_v18 = vmov 0.0   ;;  %v26_v37 = vlaneseq  ;;  %vm70_vm2 = vcmask 523264   ;;  %s1686_s0 = inlined_call_operand.vmem [shape: s32[16,1], index: 0, kind: input, shape index: {}]   ;;  %s1687_s4 = inlined_call_operand.vmem [shape: f32[64,256], index: 4, kind: input, shape index: {}]   ;;  %s1688_s3 = inlined_call_operand.vmem [shape: f32[64,256], index: 3, kind: input, shape index: {}]   ;;  %s1689_s1 = inlined_call_operand.vmem [shape: s32[16,1], index: 1, kind: input, shape index: {}]   ;;  %s1690_s2 = inlined_call_operand.vmem [shape: f32[16,1], index: 2, kind: input, shape index: {}]   ;;  %s1691_s5 = inlined_call_operand.vmem [shape: f32[64,32], index: 5, kind: input, shape index: {}]   ;;  %s1692_s6 = inlined_call_operand.vmem [shape: f32[1,32], index: 6, kind: input, shape index: {}]   ;;  %s1693_s7 = inlined_call_operand.vmem [shape: f32[16,32], index: 7, kind: output, shape index: {}]  }
   0x1   :  { %1111 = vset.pattern.permute.xlu0 %v1215_v0  ;;  %v28_v1 = vld [vmem:[%s1686_s0] sm:$0xff]  ;;  %v1264_v2 = vld [vmem:[%s1687_s4 + $0x70] sm:$0xff]  ;;  %1112 = vset.pattern.permute.xlu1 %v1215_v0  ;;  %v69_v7 = vld [vmem:[%s1688_s3 + $0x78] sm:$0xff]  ;;  %vm236_vm15 = vcmask 254976  }
   0x2   :  { %31 = vperm.xlu0 %1111, %v28_v1   ;;  %150 = vmatpush.msra.mxu3 %v1264_v2  ;;  %v1270_v3 = vld [vmem:[%s1687_s4 + $0x60] sm:$0xff]  ;;  %v1275_v4 = vld [vmem:[%s1687_s4 + $0x50] sm:$0xff]  ;;  %v67_v9 = vld [vmem:[%s1688_s3 + $0x68] sm:$0xff]  ;;  %v1457_v38 = vand.u32 127, %v26_v37 }
   0x3   :  { %1113 = vset.pattern.permute.xlu2 %v1215_v0  ;;  %362 = vmatpush.msra.mxu2 %v1264_v2  ;;  %v1282_v5 = vld [vmem:[%s1687_s4 + $0x40] sm:$0xff]  ;;  %v68_v6 = vld [vmem:[%s1688_s3 + $0x70] sm:$0xff]  ;;  %v1332_v15 = vld [vmem:[%s1687_s4 + $0x78] sm:$0xff] }
   0x4   :  { %151 = vmatpush.msra.mxu3 %v1270_v3  ;;  %85 = vmatpush.msra.mxu0 %v68_v6  ;;  %v66_v8 = vld [vmem:[%s1688_s3 + $0x60] sm:$0xff]  ;;  %v1304_v11 = vld [vmem:[%s1687_s4 + $0x30] sm:$0xff]  ;;  %v1339_v16 = vld [vmem:[%s1687_s4 + $0x68] sm:$0xff] }
   0x5   :  { %363 = vmatpush.msra.mxu2 %v1270_v3  ;;  %v38_v10 = vld [vmem:[%s1689_s1] sm:$0xff]  ;;  %108 = vmatpush.msra.mxu1 %v69_v7  ;;  %v1318_v13 = vld [vmem:[%s1687_s4 + $0x10] sm:$0xff]  ;;  %v1346_v17 = vld [vmem:[%s1687_s4 + $0x58] sm:$0xff] }
   0x6   :  { %152 = vmatpush.msra.mxu3 %v1275_v4  ;;  %86 = vmatpush.msra.mxu0 %v66_v8  ;;  %v1311_v12 = vld [vmem:[%s1687_s4 + $0x20] sm:$0xff]  ;;  %v1354_v19 = vld [vmem:[%s1687_s4 + $0x48] sm:$0xff]  ;;  %v1361_v20 = vld [vmem:[%s1687_s4 + $0x38] sm:$0xff] }
   0x7   :  { %364 = vmatpush.msra.mxu2 %v1275_v4  ;;  %109 = vmatpush.msra.mxu1 %v67_v9  ;;  %v1325_v14 = vld [vmem:[%s1687_s4] sm:$0xff]  ;;  %v64_v21 = vld [vmem:[%s1688_s3 + $0x50] sm:$0xff]  ;;  %v65_v22 = vld [vmem:[%s1688_s3 + $0x58] sm:$0xff] }
   0x8   :  { %153 = vmatpush.msra.mxu3 %v1282_v5  ;;  %v1380_v23 = vld [vmem:[%s1687_s4 + $0x28] sm:$0xff]  ;;  %87 = vmatpush.msra.mxu0 %v64_v21  ;;  %v62_v24 = vld [vmem:[%s1688_s3 + $0x40] sm:$0xff]  ;;  %v1391_v26 = vld [vmem:[%s1687_s4 + $0x18] sm:$0xff] }
   0x9   :  { %365 = vmatpush.msra.mxu2 %v1282_v5  ;;  %110 = vmatpush.msra.mxu1 %v65_v22  ;;  %v63_v25 = vld [vmem:[%s1688_s3 + $0x48] sm:$0xff]  ;;  %v60_v27 = vld [vmem:[%s1688_s3 + $0x30] sm:$0xff]  ;;  %v61_v28 = vld [vmem:[%s1688_s3 + $0x38] sm:$0xff] }
   0xa   :  { %41 = vperm.xlu0 %1111, %v38_v10   ;;  %154 = vmatpush.msra.mxu3 %v1304_v11  ;;  %v1403_v29 = vld [vmem:[%s1687_s4 + $0x8] sm:$0xff]  ;;  %v58_v30 = vld [vmem:[%s1688_s3 + $0x20] sm:$0xff]  ;;  %v56_v32 = vld [vmem:[%s1688_s3 + $0x10] sm:$0xff] }
   0xb   :  { %366 = vmatpush.msra.mxu2 %v1304_v11  ;;  %88 = vmatpush.msra.mxu0 %v62_v24  ;;  %v59_v31 = vld [vmem:[%s1688_s3 + $0x28] sm:$0xff]  ;;  %v57_v33 = vld [vmem:[%s1688_s3 + $0x18] sm:$0xff]  ;;  %v54_v34 = vld [vmem:[%s1688_s3] sm:$0xff] }
   0xc   :  { %155 = vmatpush.msra.mxu3 %v1311_v12  ;;  %111 = vmatpush.msra.mxu1 %v63_v25  ;;  %v55_v35 = vld [vmem:[%s1688_s3 + $0x8] sm:$0xff]  ;;  %s1217_s3 = smov 64  }
   0xd   :  { %367 = vmatpush.msra.mxu2 %v1311_v12  ;;  %89 = vmatpush.msra.mxu0 %v60_v27  ;;  %v29_v62 = vld [vmem:[%s1686_s0 + $0x8] sm:$0xff] }
   0xe   :  { %156 = vmatpush.msra.mxu3 %v1318_v13  ;;  %112 = vmatpush.msra.mxu1 %v61_v28  ;;  %v39_v0 = vld [vmem:[%s1689_s1 + $0x8] sm:$0xff] }
   0xf   :  { %368 = vmatpush.msra.mxu2 %v1318_v13  ;;  %90 = vmatpush.msra.mxu0 %v58_v30 }
  0x10   :  { %157 = vmatpush.msra.mxu3 %v1325_v14  ;;  %113 = vmatpush.msra.mxu1 %v59_v31 }
  0x11   :  { %369 = vmatpush.msra.mxu2 %v1325_v14  ;;  %158 = vmatmul.f32.vlgmr.msra.gmra.mxu3 %v1216_v18 }
  0x12   :  { %170 = vmatpush.msrb.mxu3 %v1332_v15  ;;  %91 = vmatpush.msra.mxu0 %v56_v32 }
  0x13   :  { %586 = vmatpush.msrb.mxu2 %v1264_v2  ;;  %114 = vmatpush.msra.mxu1 %v57_v33 }
  0x14   :  { %171 = vmatpush.msrb.mxu3 %v1339_v16  ;;  %92 = vmatpush.msra.mxu0 %v54_v34 }
  0x15   :  { %587 = vmatpush.msrb.mxu2 %v1270_v3  ;;  %115 = vmatpush.msra.mxu1 %v55_v35 }
  0x16   :  { %172 = vmatpush.msrb.mxu3 %v1346_v17  ;;  %250 = vmatpush.msrb.mxu0 %v1264_v2 }
  0x17   :  { %588 = vmatpush.msrb.mxu2 %v1275_v4  ;;  %270 = vmatpush.msrb.mxu1 %v1332_v15 }
  0x18   :  { %173 = vmatpush.msrb.mxu3 %v1354_v19  ;;  %251 = vmatpush.msrb.mxu0 %v1270_v3 }
  0x19   :  { %589 = vmatpush.msrb.mxu2 %v1282_v5  ;;  %271 = vmatpush.msrb.mxu1 %v1339_v16 }
  0x1a   :  { %174 = vmatpush.msrb.mxu3 %v1361_v20  ;;  %252 = vmatpush.msrb.mxu0 %v1275_v4 }
  0x1b   :  { %590 = vmatpush.msrb.mxu2 %v1304_v11  ;;  %272 = vmatpush.msrb.mxu1 %v1346_v17 }
  0x1c   :  { %175 = vmatpush.msrb.mxu3 %v1380_v23  ;;  %253 = vmatpush.msrb.mxu0 %v1282_v5 }
  0x1d   :  { %591 = vmatpush.msrb.mxu2 %v1311_v12  ;;  %273 = vmatpush.msrb.mxu1 %v1354_v19 }
  0x1e   :  { %176 = vmatpush.msrb.mxu3 %v1391_v26  ;;  %254 = vmatpush.msrb.mxu0 %v1304_v11 }
  0x1f   :  { %592 = vmatpush.msrb.mxu2 %v1318_v13  ;;  %274 = vmatpush.msrb.mxu1 %v1361_v20 }
  0x20   :  { %177 = vmatpush.msrb.mxu3 %v1403_v29  ;;  %255 = vmatpush.msrb.mxu0 %v1311_v12 }
  0x21   :  { %593 = vmatpush.msrb.mxu2 %v1325_v14  ;;  %178 = vmatmul.f32.vlgmr.msrb.gmra.mxu3 %v1216_v18 }
  0x22   :  { %382 = vmatpush.msra.mxu3 %v1332_v15  ;;  %275 = vmatpush.msrb.mxu1 %v1380_v23 }
  0x23   :  { %256 = vmatpush.msrb.mxu0 %v1318_v13  ;;  %44 = vperm.xlu2 %1113, %v39_v0  }
  0x24   :  { %383 = vmatpush.msra.mxu3 %v1339_v16  ;;  %276 = vmatpush.msrb.mxu1 %v1391_v26 }
  0x25   :  { %257 = vmatpush.msrb.mxu0 %v1325_v14 }
  0x26   :  { %384 = vmatpush.msra.mxu3 %v1346_v17  ;;  %277 = vmatpush.msrb.mxu1 %v1403_v29 }
  0x28   :  { %385 = vmatpush.msra.mxu3 %v1354_v19 }
  0x2a   :  { %386 = vmatpush.msra.mxu3 %v1361_v20 }
  0x2c   :  { %387 = vmatpush.msra.mxu3 %v1380_v23 }
  0x2e   :  { %388 = vmatpush.msra.mxu3 %v1391_v26 }
  0x30   :  { %389 = vmatpush.msra.mxu3 %v1403_v29 }
  0x32   :  { %606 = vmatpush.msrb.mxu3 %v1332_v15 }
  0x34   :  { %607 = vmatpush.msrb.mxu3 %v1339_v16 }
  0x36   :  { %608 = vmatpush.msrb.mxu3 %v1346_v17 }
  0x38   :  { %609 = vmatpush.msrb.mxu3 %v1354_v19 }
  0x3a   :  { %610 = vmatpush.msrb.mxu3 %v1361_v20 }
  0x3c   :  { %611 = vmatpush.msrb.mxu3 %v1380_v23 }
  0x3e   :  { %612 = vmatpush.msrb.mxu3 %v1391_v26 }
  0x40   :  { %613 = vmatpush.msrb.mxu3 %v1403_v29 }
  0x74   :  { %v32_v36 = vpop.permute.xlu0 %31 }
  0x75   :  { %vm36_vm0 = vcmp.eq.s32.totalorder %v1457_v38, %v32_v36 }
  0x7c   :  { %v42_v39 = vpop.permute.xlu0 %41 }
  0x7d   :  { %vm46_vm1 = vcmp.eq.s32.totalorder %v1457_v38, %v42_v39  ;;  %v45_v36 = vpop.permute.xlu2 %44 }
  0x7e   :  { %vm48_vm3 = vmor %vm36_vm0, %vm46_vm1  ;;  %vm47_vm13 = vcmp.eq.s32.totalorder %v1457_v38, %v45_v36  ;;  %vm238_vm0 = vcmask 517376  }
  0x7f   :  { %v1070_v40 = vsel %vm48_vm3, 1.0, %v1216_v18 }
  0x80   :  { %1072 = vmatmul.msk.f32.vlgmr.msra.gmra.mxu0 %vm70_vm2, %v1070_v40  ;;  %1074 = vmatmul.msk.f32.vlgmr.msra.gmra.mxu1 %vm70_vm2, %v1070_v40 }
  0x81   :  { %474 = vmatpush.msra.mxu0 %v1264_v2  ;;  %494 = vmatpush.msra.mxu1 %v1332_v15 }
  0x83   :  { %475 = vmatpush.msra.mxu0 %v1270_v3  ;;  %495 = vmatpush.msra.mxu1 %v1339_v16 }
  0x85   :  { %476 = vmatpush.msra.mxu0 %v1275_v4  ;;  %496 = vmatpush.msra.mxu1 %v1346_v17 }
  0x87   :  { %477 = vmatpush.msra.mxu0 %v1282_v5  ;;  %497 = vmatpush.msra.mxu1 %v1354_v19 }
  0x89   :  { %478 = vmatpush.msra.mxu0 %v1304_v11  ;;  %498 = vmatpush.msra.mxu1 %v1361_v20 }
  0x8b   :  { %479 = vmatpush.msra.mxu0 %v1311_v12  ;;  %499 = vmatpush.msra.mxu1 %v1380_v23 }
  0x8d   :  { %480 = vmatpush.msra.mxu0 %v1318_v13  ;;  %500 = vmatpush.msra.mxu1 %v1391_v26 }
  0x8f   :  { %481 = vmatpush.msra.mxu0 %v1325_v14  ;;  %501 = vmatpush.msra.mxu1 %v1403_v29 }
  0x94   :  { %v159_v41 = vpop.f32.mrf.mxu3 }
  0xa4   :  { %v179_v48 = vpop.f32.mrf.mxu3 }
  0xfd   :  { %v1481_v42 = vpop.f32.mrf.mxu0  ;;  %v1484_v47 = vpop.f32.mrf.mxu1 }
  0xfe   :  { %v182_v43 = vadd.f32 %v159_v41, %v1481_v42  ;;  %v183_v50 = vadd.f32 %v179_v48, %v1484_v47 }
 0x100   :  { %v1076_v44 = vmul.f32 -1.442695, %v182_v43  ;;  %v1077_v63 = vmul.f32 -1.442695, %v183_v50 }
 0x102   :  { %1115 = vpow2.f32 %v1076_v44 }
 0x108   :  { %v1116_v45 = vpop.eup %1115 }
 0x109   :  { %v187_v46 = vadd.f32 1.0, %v1116_v45 }
 0x10b   :  { %1117 = vrcp.f32 %v187_v46  ;;  %v199_v53 = vand.u32 2147483648, %v187_v46  ;;  %v197_v55 = vand.u32 2147483647, %v187_v46  ;;  %vm193_vm5 = vweird.f32 %v187_v46 }
 0x10c   :  { %1119 = vtanh.f32 %v183_v50 }
 0x10d   :  { %v200_v57 = vor.u32 1.1754944e-38, %v199_v53  ;;  %vm198_vm7 = vcmp.eq.f32.partialorder %v197_v55, 8.507059e+37  ;;  %1121 = vpow2.f32 %v1077_v63 }
 0x111   :  { %v1118_v49 = vpop.eup %1117 }
 0x112   :  { %v189_v51 = vmul.f32 %v1118_v49, %v187_v46  ;;  %vm194_vm4 = vweird.f32 %v1118_v49  ;;  %v1120_v59 = vpop.eup %1119 }
 0x113   :  { %vm195_vm6 = vmor %vm193_vm5, %vm194_vm4  ;;  %v1122_v1 = vpop.eup %1121 }
 0x114   :  { %v190_v52 = vsub.f32 1.0, %v189_v51  ;;  %v207_v6 = vadd.f32 1.0, %v1122_v1 }
 0x116   :  { %v191_v54 = vmul.f32 %v1118_v49, %v190_v52  ;;  %1123 = vrcp.f32 %v207_v6  ;;  %v219_v27 = vand.u32 2147483648, %v207_v6  ;;  %vm213_vm9 = vweird.f32 %v207_v6 }
 0x117   :  { %v217_v28 = vand.u32 2147483647, %v207_v6 }
 0x118   :  { %v192_v56 = vadd.f32 %v1118_v49, %v191_v54  ;;  %v220_v31 = vor.u32 1.1754944e-38, %v219_v27 }
 0x119   :  { %vm218_vm11 = vcmp.eq.f32.partialorder %v217_v28, 8.507059e+37 }
 0x11a   :  { %v196_v58 = vsel %vm195_vm6, %v1118_v49, %v192_v56 }
 0x11b   :  { %v201_v60 = vsel %vm198_vm7, %v200_v57, %v196_v58 }
 0x11c   :  { %v224_v61 = vmul.f32 %v1120_v59, %v201_v60  ;;  %v1124_v7 = vpop.eup %1123  ;;  %v223_v21 = vmul.f32 0.0, %v201_v60 }
 0x11d   :  { %v209_v8 = vmul.f32 %v1124_v7, %v207_v6  ;;  %vm214_vm8 = vweird.f32 %v1124_v7 }
 0x11e   :  { %226 = vrot.lane.b32.xlu1 %v224_v61, %s1217_s3  ;;  %vm215_vm10 = vmor %vm213_vm9, %vm214_vm8 }
 0x11f   :  { %v210_v9 = vsub.f32 1.0, %v209_v8 }
 0x121   :  { %v211_v10 = vmul.f32 %v1124_v7, %v210_v9 }
 0x123   :  { %v212_v25 = vadd.f32 %v1124_v7, %v211_v10 }
 0x125   :  { %v216_v30 = vsel %vm215_vm10, %v1124_v7, %v212_v25 }
 0x126   :  { %34 = vperm.xlu1 %1112, %v29_v62   ;;  %v221_v33 = vsel %vm218_vm11, %v220_v31, %v216_v30 }
 0x190   :  { %v227_v22 = vpop.permute.xlu1 %226 }
 0x191   :  { %v1494_v24 = vadd.f32 %v227_v22, %v223_v21 }
 0x193   :  { %1125 = vtanh.f32 %v1494_v24  ;;  %v330_v59 = vrot.slane %v1494_v24, 6 }
 0x198   :  { %v35_v35 = vpop.permute.xlu1 %34 }
 0x199   :  { %v1126_v32 = vpop.eup %1125  ;;  %vm37_vm12 = vcmp.eq.s32.totalorder %v1457_v38, %v35_v35 }
 0x19a   :  { %v231_v34 = vmul.f32 %v1126_v32, %v221_v33  ;;  %vm49_vm14 = vmor %vm37_vm12, %vm47_vm13 }
 0x19b   :  { %v1071_v37 = vsel %vm49_vm14, 1.0, %v1216_v18 }
 0x19c   :  { %233 = vrot.lane.b32.xlu2 %v231_v34, %s1217_s3  ;;  %1073 = vmatmul.msk.f32.gmra.mxu0 %vm70_vm2, %v1071_v37 }
 0x19d   :  { %1075 = vmatmul.msk.f32.gmra.mxu1 %vm70_vm2, %v1071_v37 }
 0x1f6   :  { %v234_v39 = vpop.permute.xlu2 %233 }
 0x1f7   :  { %1078 = vmatmul.msk.f32.vlgmr.msrb.gmra.mxu0 %vm70_vm2, %v234_v39  ;;  %1079 = vmatmul.msk.f32.vlgmr.msrb.gmra.mxu1 %vm70_vm2, %v234_v39  ;;  %237 = vst.msk [vmem:[#allocation2] sm:$0x3] %vm236_vm15, %v234_v39 }
 0x1f8   :  { %687 = vmatpush.msrb.mxu0 %v1264_v2  ;;  %707 = vmatpush.msrb.mxu1 %v1332_v15  ;;  %239 = vst.msk [vmem:[#allocation2 + $0xe] sm:$0x3] %vm238_vm0, %v234_v39 }
 0x1fa   :  { %688 = vmatpush.msrb.mxu0 %v1270_v3  ;;  %708 = vmatpush.msrb.mxu1 %v1339_v16 }
 0x1fc   :  { %689 = vmatpush.msrb.mxu0 %v1275_v4  ;;  %709 = vmatpush.msrb.mxu1 %v1346_v17 }
 0x1fe   :  { %690 = vmatpush.msrb.mxu0 %v1282_v5  ;;  %710 = vmatpush.msrb.mxu1 %v1354_v19 }
 0x200   :  { %691 = vmatpush.msrb.mxu0 %v1304_v11  ;;  %711 = vmatpush.msrb.mxu1 %v1361_v20 }
 0x202   :  { %692 = vmatpush.msrb.mxu0 %v1311_v12  ;;  %712 = vmatpush.msrb.mxu1 %v1380_v23 }
 0x204   :  { %693 = vmatpush.msrb.mxu0 %v1318_v13  ;;  %713 = vmatpush.msrb.mxu1 %v1391_v26 }
 0x206   :  { %694 = vmatpush.msrb.mxu0 %v1325_v14  ;;  %714 = vmatpush.msrb.mxu1 %v1403_v29 }
 0x219   :  { %v1523_v18 = vpop.f32.mrf.mxu0 }
 0x21a   :  { %v1526_v43 = vpop.f32.mrf.mxu1 }
 0x274   :  { %v259_v38 = vpop.f32.mrf.mxu0  ;;  %v279_v48 = vpop.f32.mrf.mxu1 }
 0x275   :  { %v284_v40 = vrot.slane %v259_v38, 6  ;;  %v285_v49 = vrot.slane %v279_v48, 6 }
 0x277   :  { %v288_v41 = vadd.f32 %v284_v40, %v1481_v42  ;;  %v289_v51 = vadd.f32 %v285_v49, %v1484_v47 }
 0x279   :  { %v1080_v44 = vmul.f32 -1.442695, %v288_v41  ;;  %v1081_v1 = vmul.f32 -1.442695, %v289_v51 }
 0x27b   :  { %1127 = vpow2.f32 %v1080_v44 }
 0x281   :  { %v1128_v45 = vpop.eup %1127 }
 0x282   :  { %v293_v46 = vadd.f32 1.0, %v1128_v45 }
 0x284   :  { %1129 = vrcp.f32 %v293_v46  ;;  %v305_v54 = vand.u32 2147483648, %v293_v46  ;;  %v303_v56 = vand.u32 2147483647, %v293_v46  ;;  %vm299_vm3 = vweird.f32 %v293_v46 }
 0x285   :  { %1131 = vtanh.f32 %v289_v51 }
 0x286   :  { %v306_v58 = vor.u32 1.1754944e-38, %v305_v54  ;;  %vm304_vm5 = vcmp.eq.f32.partialorder %v303_v56, 8.507059e+37  ;;  %1133 = vpow2.f32 %v1081_v1 }
 0x28a   :  { %v1130_v50 = vpop.eup %1129 }
 0x28b   :  { %v295_v52 = vmul.f32 %v1130_v50, %v293_v46  ;;  %vm300_vm1 = vweird.f32 %v1130_v50  ;;  %v1132_v61 = vpop.eup %1131 }
 0x28c   :  { %vm301_vm4 = vmor %vm299_vm3, %vm300_vm1  ;;  %v1134_v6 = vpop.eup %1133 }
 0x28d   :  { %v296_v53 = vsub.f32 1.0, %v295_v52  ;;  %v313_v7 = vadd.f32 1.0, %v1134_v6 }
 0x28f   :  { %v297_v55 = vmul.f32 %v1130_v50, %v296_v53  ;;  %1135 = vrcp.f32 %v313_v7  ;;  %v325_v27 = vand.u32 2147483648, %v313_v7  ;;  %vm319_vm7 = vweird.f32 %v313_v7 }
 0x290   :  { %v323_v28 = vand.u32 2147483647, %v313_v7 }
 0x291   :  { %v298_v57 = vadd.f32 %v1130_v50, %v297_v55  ;;  %v326_v31 = vor.u32 1.1754944e-38, %v325_v27 }
 0x292   :  { %vm324_vm9 = vcmp.eq.f32.partialorder %v323_v28, 8.507059e+37 }
 0x293   :  { %v302_v60 = vsel %vm301_vm4, %v1130_v50, %v298_v57 }
 0x294   :  { %v307_v62 = vsel %vm304_vm5, %v306_v58, %v302_v60 }
 0x295   :  { %v333_v63 = vmul.f32 %v1132_v61, %v307_v62  ;;  %v332_v0 = vmul.f32 %v330_v59, %v307_v62  ;;  %v1136_v8 = vpop.eup %1135 }
 0x296   :  { %v315_v9 = vmul.f32 %v1136_v8, %v313_v7  ;;  %vm320_vm6 = vweird.f32 %v1136_v8 }
 0x297   :  { %335 = vrot.lane.b32.xlu0 %v333_v63, %s1217_s3  ;;  %vm321_vm8 = vmor %vm319_vm7, %vm320_vm6 }
 0x298   :  { %v316_v10 = vsub.f32 1.0, %v315_v9 }
 0x29a   :  { %v317_v21 = vmul.f32 %v1136_v8, %v316_v10 }
 0x29c   :  { %v318_v24 = vadd.f32 %v1136_v8, %v317_v21 }
 0x29e   :  { %v322_v30 = vsel %vm321_vm8, %v1136_v8, %v318_v24 }
 0x29f   :  { %v327_v33 = vsel %vm324_vm9, %v326_v31, %v322_v30 }
 0x309   :  { %v336_v22 = vpop.permute.xlu0 %335 }
 0x30a   :  { %v1531_v25 = vadd.f32 %v336_v22, %v332_v0 }
 0x30c   :  { %1137 = vtanh.f32 %v1531_v25  ;;  %v442_v57 = vrot.slane %v1531_v25, 6 }
 0x312   :  { %v1138_v32 = vpop.eup %1137 }
 0x313   :  { %v1534_v34 = vmul.f32 %v1138_v32, %v327_v33 }
 0x315   :  { %v349_v35 = vrot.slane %v1534_v34, 2 }
 0x317   :  { %350 = vrot.lane.b32.xlu1 %v349_v35, %s1217_s3 }
 0x389   :  { %v351_v36 = vpop.permute.xlu1 %350 }
 0x38a   :  { %1082 = vmatmul.msk.f32.vlgmr.msra.gmra.mxu2 %vm70_vm2, %v351_v36  ;;  %1083 = vmatmul.msk.f32.vlgmr.msra.gmra.mxu3 %vm70_vm2, %v351_v36 }
 0x38b   :  { %797 = vmatpush.msra.mxu2 %v1264_v2  ;;  %817 = vmatpush.msra.mxu3 %v1332_v15 }
 0x38d   :  { %798 = vmatpush.msra.mxu2 %v1270_v3  ;;  %818 = vmatpush.msra.mxu3 %v1339_v16 }
 0x38f   :  { %799 = vmatpush.msra.mxu2 %v1275_v4  ;;  %819 = vmatpush.msra.mxu3 %v1346_v17 }
 0x391   :  { %800 = vmatpush.msra.mxu2 %v1282_v5  ;;  %820 = vmatpush.msra.mxu3 %v1354_v19 }
 0x393   :  { %801 = vmatpush.msra.mxu2 %v1304_v11  ;;  %821 = vmatpush.msra.mxu3 %v1361_v20 }
 0x395   :  { %802 = vmatpush.msra.mxu2 %v1311_v12  ;;  %822 = vmatpush.msra.mxu3 %v1380_v23 }
 0x397   :  { %803 = vmatpush.msra.mxu2 %v1318_v13  ;;  %823 = vmatpush.msra.mxu3 %v1391_v26 }
 0x399   :  { %804 = vmatpush.msra.mxu2 %v1325_v14  ;;  %824 = vmatpush.msra.mxu3 %v1403_v29 }
 0x40d   :  { %v371_v37 = vpop.f32.mrf.mxu2  ;;  %v391_v45 = vpop.f32.mrf.mxu3 }
 0x40e   :  { %v396_v39 = vrot.slane %v371_v37, 4  ;;  %v397_v46 = vrot.slane %v391_v45, 4 }
 0x410   :  { %v400_v38 = vadd.f32 %v396_v39, %v1481_v42  ;;  %v401_v49 = vadd.f32 %v397_v46, %v1484_v47 }
 0x412   :  { %v1084_v40 = vmul.f32 -1.442695, %v400_v38  ;;  %v1085_v63 = vmul.f32 -1.442695, %v401_v49 }
 0x414   :  { %1139 = vpow2.f32 %v1084_v40 }
 0x41a   :  { %v1140_v41 = vpop.eup %1139 }
 0x41b   :  { %v405_v44 = vadd.f32 1.0, %v1140_v41 }
 0x41d   :  { %1141 = vrcp.f32 %v405_v44  ;;  %v417_v52 = vand.u32 2147483648, %v405_v44  ;;  %v415_v54 = vand.u32 2147483647, %v405_v44  ;;  %vm411_vm11 = vweird.f32 %v405_v44 }
 0x41e   :  { %1143 = vtanh.f32 %v401_v49 }
 0x41f   :  { %v418_v56 = vor.u32 1.1754944e-38, %v417_v52  ;;  %vm416_vm13 = vcmp.eq.f32.partialorder %v415_v54, 8.507059e+37  ;;  %1145 = vpow2.f32 %v1085_v63 }
 0x423   :  { %v1142_v48 = vpop.eup %1141 }
 0x424   :  { %v407_v50 = vmul.f32 %v1142_v48, %v405_v44  ;;  %vm412_vm10 = vweird.f32 %v1142_v48  ;;  %v1144_v59 = vpop.eup %1143 }
 0x425   :  { %vm413_vm12 = vmor %vm411_vm11, %vm412_vm10  ;;  %v1146_v0 = vpop.eup %1145 }
 0x426   :  { %v408_v51 = vsub.f32 1.0, %v407_v50  ;;  %v425_v1 = vadd.f32 1.0, %v1146_v0 }
 0x428   :  { %v409_v53 = vmul.f32 %v1142_v48, %v408_v51  ;;  %1147 = vrcp.f32 %v425_v1  ;;  %v437_v25 = vand.u32 2147483648, %v425_v1  ;;  %vm431_vm1 = vweird.f32 %v425_v1 }
 0x429   :  { %v435_v24 = vand.u32 2147483647, %v425_v1 }
 0x42a   :  { %v410_v55 = vadd.f32 %v1142_v48, %v409_v53  ;;  %v438_v28 = vor.u32 1.1754944e-38, %v437_v25 }
 0x42b   :  { %vm436_vm4 = vcmp.eq.f32.partialorder %v435_v24, 8.507059e+37 }
 0x42c   :  { %v414_v58 = vsel %vm413_vm12, %v1142_v48, %v410_v55 }
 0x42d   :  { %v419_v60 = vsel %vm416_vm13, %v418_v56, %v414_v58 }
 0x42e   :  { %v445_v61 = vmul.f32 %v1144_v59, %v419_v60  ;;  %v444_v62 = vmul.f32 %v442_v57, %v419_v60  ;;  %v1148_v6 = vpop.eup %1147 }
 0x42f   :  { %v427_v7 = vmul.f32 %v1148_v6, %v425_v1  ;;  %vm432_vm14 = vweird.f32 %v1148_v6 }
 0x430   :  { %447 = vrot.lane.b32.xlu2 %v445_v61, %s1217_s3  ;;  %vm433_vm3 = vmor %vm431_vm1, %vm432_vm14 }
 0x431   :  { %v428_v8 = vsub.f32 1.0, %v427_v7 }
 0x433   :  { %v429_v9 = vmul.f32 %v1148_v6, %v428_v8 }
 0x435   :  { %v430_v22 = vadd.f32 %v1148_v6, %v429_v9 }
 0x437   :  { %v434_v27 = vsel %vm433_vm3, %v1148_v6, %v430_v22 }
 0x438   :  { %v439_v31 = vsel %vm436_vm4, %v438_v28, %v434_v27 }
 0x48a   :  { %v448_v10 = vpop.permute.xlu2 %447 }
 0x48b   :  { %v1560_v21 = vadd.f32 %v448_v10, %v444_v62 }
 0x48d   :  { %1149 = vtanh.f32 %v1560_v21  ;;  %v554_v36 = vrot.slane %v1560_v21, 6 }
 0x493   :  { %v1150_v30 = vpop.eup %1149 }
 0x494   :  { %v1563_v32 = vmul.f32 %v1150_v30, %v439_v31 }
 0x496   :  { %v461_v33 = vrot.slane %v1563_v32, 4 }
 0x498   :  { %462 = vrot.lane.b32.xlu0 %v461_v33, %s1217_s3 }
 0x50a   :  { %v463_v35 = vpop.permute.xlu0 %462 }
 0x50b   :  { %1086 = vmatmul.msk.f32.vlgmr.msra.gmra.mxu0 %vm70_vm2, %v463_v35  ;;  %1087 = vmatmul.msk.f32.vlgmr.msra.gmra.mxu1 %vm70_vm2, %v463_v35 }
 0x50c   :  { %907 = vmatpush.msra.mxu0 %v1264_v2  ;;  %927 = vmatpush.msra.mxu1 %v1332_v15 }
 0x50e   :  { %908 = vmatpush.msra.mxu0 %v1270_v3  ;;  %928 = vmatpush.msra.mxu1 %v1339_v16 }
 0x510   :  { %909 = vmatpush.msra.mxu0 %v1275_v4  ;;  %929 = vmatpush.msra.mxu1 %v1346_v17 }
 0x512   :  { %910 = vmatpush.msra.mxu0 %v1282_v5  ;;  %930 = vmatpush.msra.mxu1 %v1354_v19 }
 0x514   :  { %911 = vmatpush.msra.mxu0 %v1304_v11  ;;  %931 = vmatpush.msra.mxu1 %v1361_v20 }
 0x516   :  { %912 = vmatpush.msra.mxu0 %v1311_v12  ;;  %932 = vmatpush.msra.mxu1 %v1380_v23 }
 0x518   :  { %913 = vmatpush.msra.mxu0 %v1318_v13  ;;  %933 = vmatpush.msra.mxu1 %v1391_v26 }
 0x51a   :  { %914 = vmatpush.msra.mxu0 %v1325_v14  ;;  %934 = vmatpush.msra.mxu1 %v1403_v29 }
 0x588   :  { %v483_v2 = vpop.f32.mrf.mxu0  ;;  %v503_v16 = vpop.f32.mrf.mxu1 }
 0x589   :  { %v508_v3 = vrot.slane %v483_v2, 2  ;;  %v509_v12 = vrot.slane %v503_v16, 2 }
 0x58b   :  { %v512_v4 = vadd.f32 %v508_v3, %v1481_v42  ;;  %v513_v13 = vadd.f32 %v509_v12, %v1484_v47 }
 0x58d   :  { %v1088_v5 = vmul.f32 -1.442695, %v512_v4  ;;  %v1089_v47 = vmul.f32 -1.442695, %v513_v13 }
 0x58f   :  { %1151 = vpow2.f32 %v1088_v5 }
 0x595   :  { %v1152_v11 = vpop.eup %1151 }
 0x596   :  { %v517_v15 = vadd.f32 1.0, %v1152_v11 }
 0x598   :  { %1153 = vrcp.f32 %v517_v15  ;;  %v529_v14 = vand.u32 2147483648, %v517_v15  ;;  %v527_v26 = vand.u32 2147483647, %v517_v15  ;;  %vm523_vm6 = vweird.f32 %v517_v15 }
 0x599   :  { %1155 = vtanh.f32 %v513_v13 }
 0x59a   :  { %v530_v42 = vor.u32 1.1754944e-38, %v529_v14  ;;  %vm528_vm8 = vcmp.eq.f32.partialorder %v527_v26, 8.507059e+37  ;;  %1157 = vpow2.f32 %v1089_v47 }
 0x59e   :  { %v1154_v17 = vpop.eup %1153 }
 0x59f   :  { %v519_v19 = vmul.f32 %v1154_v17, %v517_v15  ;;  %vm524_vm5 = vweird.f32 %v1154_v17  ;;  %v1156_v39 = vpop.eup %1155 }
 0x5a0   :  { %vm525_vm7 = vmor %vm523_vm6, %vm524_vm5  ;;  %v1158_v44 = vpop.eup %1157 }
 0x5a1   :  { %v520_v20 = vsub.f32 1.0, %v519_v19  ;;  %v537_v45 = vadd.f32 1.0, %v1158_v44 }
 0x5a3   :  { %v521_v23 = vmul.f32 %v1154_v17, %v520_v20  ;;  %1159 = vrcp.f32 %v537_v45  ;;  %v549_v54 = vand.u32 2147483648, %v537_v45  ;;  %vm543_vm10 = vweird.f32 %v537_v45 }
 0x5a4   :  { %v547_v55 = vand.u32 2147483647, %v537_v45 }
 0x5a5   :  { %v522_v29 = vadd.f32 %v1154_v17, %v521_v23  ;;  %v550_v57 = vor.u32 1.1754944e-38, %v549_v54 }
 0x5a6   :  { %vm548_vm12 = vcmp.eq.f32.partialorder %v547_v55, 8.507059e+37 }
 0x5a7   :  { %v526_v37 = vsel %vm525_vm7, %v1154_v17, %v522_v29 }
 0x5a8   :  { %v531_v38 = vsel %vm528_vm8, %v530_v42, %v526_v37 }
 0x5a9   :  { %v557_v40 = vmul.f32 %v1156_v39, %v531_v38  ;;  %v556_v41 = vmul.f32 %v554_v36, %v531_v38  ;;  %v1160_v46 = vpop.eup %1159 }
 0x5aa   :  { %v539_v48 = vmul.f32 %v1160_v46, %v537_v45  ;;  %vm544_vm9 = vweird.f32 %v1160_v46 }
 0x5ab   :  { %559 = vrot.lane.b32.xlu1 %v557_v40, %s1217_s3  ;;  %vm545_vm11 = vmor %vm543_vm10, %vm544_vm9 }
 0x5ac   :  { %v540_v49 = vsub.f32 1.0, %v539_v48 }
 0x5ae   :  { %v541_v50 = vmul.f32 %v1160_v46, %v540_v49 }
 0x5b0   :  { %v542_v53 = vadd.f32 %v1160_v46, %v541_v50 }
 0x5b2   :  { %v546_v56 = vsel %vm545_vm11, %v1160_v46, %v542_v53 }
 0x5b3   :  { %v551_v59 = vsel %vm548_vm12, %v550_v57, %v546_v56 }
 0x61d   :  { %v560_v51 = vpop.permute.xlu1 %559 }
 0x61e   :  { %v562_v52 = vadd.f32 %v560_v51, %v556_v41 }
 0x620   :  { %1161 = vtanh.f32 %v562_v52  ;;  %v660_v31 = vrot.slane %v562_v52, 6 }
 0x626   :  { %v1162_v58 = vpop.eup %1161 }
 0x627   :  { %v1589_v60 = vmul.f32 %v1162_v58, %v551_v59 }
 0x629   :  { %v573_v61 = vrot.slane %v1589_v60, 6 }
 0x62b   :  { %574 = vrot.lane.b32.xlu2 %v573_v61, %s1217_s3 }
 0x685   :  { %v575_v62 = vpop.permute.xlu2 %574 }
 0x686   :  { %1090 = vmatmul.msk.f32.vlgmr.msrb.gmra.mxu2 %vm70_vm2, %v575_v62  ;;  %1091 = vmatmul.msk.f32.vlgmr.msrb.gmra.mxu3 %vm70_vm2, %v575_v62 }
 0x709   :  { %v595_v63 = vpop.f32.mrf.mxu2  ;;  %v615_v8 = vpop.f32.mrf.mxu3 }
 0x70a   :  { %v618_v0 = vadd.f32 %v595_v63, %v1523_v18  ;;  %v619_v10 = vadd.f32 %v615_v8, %v1526_v43 }
 0x70c   :  { %v1092_v1 = vmul.f32 -1.442695, %v618_v0  ;;  %v1093_v5 = vmul.f32 -1.442695, %v619_v10 }
 0x70e   :  { %1163 = vpow2.f32 %v1092_v1 }
 0x714   :  { %v1164_v6 = vpop.eup %1163 }
 0x715   :  { %v623_v7 = vadd.f32 1.0, %v1164_v6 }
 0x717   :  { %1165 = vrcp.f32 %v623_v7  ;;  %v635_v25 = vand.u32 2147483648, %v623_v7  ;;  %v633_v27 = vand.u32 2147483647, %v623_v7  ;;  %vm629_vm14 = vweird.f32 %v623_v7 }
 0x718   :  { %1167 = vtanh.f32 %v619_v10 }
 0x719   :  { %v636_v30 = vor.u32 1.1754944e-38, %v635_v25  ;;  %vm634_vm3 = vcmp.eq.f32.partialorder %v633_v27, 8.507059e+37  ;;  %1169 = vpow2.f32 %v1093_v5 }
 0x71d   :  { %v1166_v9 = vpop.eup %1165 }
 0x71e   :  { %v625_v21 = vmul.f32 %v1166_v9, %v623_v7  ;;  %vm630_vm13 = vweird.f32 %v1166_v9  ;;  %v1168_v35 = vpop.eup %1167 }
 0x71f   :  { %vm631_vm1 = vmor %vm629_vm14, %vm630_vm13  ;;  %v1170_v11 = vpop.eup %1169 }
 0x720   :  { %v626_v22 = vsub.f32 1.0, %v625_v21  ;;  %v643_v15 = vadd.f32 1.0, %v1170_v11 }
 0x722   :  { %v627_v24 = vmul.f32 %v1166_v9, %v626_v22  ;;  %1171 = vrcp.f32 %v643_v15  ;;  %v655_v23 = vand.u32 2147483648, %v643_v15  ;;  %vm649_vm5 = vweird.f32 %v643_v15 }
 0x723   :  { %v653_v26 = vand.u32 2147483647, %v643_v15 }
 0x724   :  { %v628_v28 = vadd.f32 %v1166_v9, %v627_v24  ;;  %v656_v42 = vor.u32 1.1754944e-38, %v655_v23 }
 0x725   :  { %vm654_vm7 = vcmp.eq.f32.partialorder %v653_v26, 8.507059e+37 }
 0x726   :  { %v632_v33 = vsel %vm631_vm1, %v1166_v9, %v628_v28 }
 0x727   :  { %v637_v2 = vsel %vm634_vm3, %v636_v30, %v632_v33 }
 0x728   :  { %v663_v3 = vmul.f32 %v1168_v35, %v637_v2  ;;  %v662_v4 = vmul.f32 %v660_v31, %v637_v2  ;;  %v1172_v16 = vpop.eup %1171 }
 0x729   :  { %v645_v12 = vmul.f32 %v1172_v16, %v643_v15  ;;  %vm650_vm4 = vweird.f32 %v1172_v16 }
 0x72a   :  { %665 = vrot.lane.b32.xlu0 %v663_v3, %s1217_s3  ;;  %vm651_vm6 = vmor %vm649_vm5, %vm650_vm4 }
 0x72b   :  { %v646_v17 = vsub.f32 1.0, %v645_v12 }
 0x72d   :  { %v647_v13 = vmul.f32 %v1172_v16, %v646_v17 }
 0x72f   :  { %v648_v14 = vadd.f32 %v1172_v16, %v647_v13 }
 0x731   :  { %v652_v29 = vsel %vm651_vm6, %v1172_v16, %v648_v14 }
 0x732   :  { %v657_v37 = vsel %vm654_vm7, %v656_v42, %v652_v29 }
 0x79c   :  { %v666_v19 = vpop.permute.xlu0 %665 }
 0x79d   :  { %v668_v20 = vadd.f32 %v666_v19, %v662_v4 }
 0x79f   :  { %1173 = vtanh.f32 %v668_v20  ;;  %v767_v59 = vrot.slane %v668_v20, 6 }
 0x7a5   :  { %v1174_v36 = vpop.eup %1173 }
 0x7a6   :  { %v670_v39 = vmul.f32 %v1174_v36, %v657_v37 }
 0x7a8   :  { %672 = vrot.lane.b32.xlu1 %v670_v39, %s1217_s3 }
 0x81a   :  { %v1599_v38 = vpop.permute.xlu1 %672 }
 0x81b   :  { %1094 = vmatmul.msk.f32.vlgmr.msrb.gmra.mxu0 %vm70_vm2, %v1599_v38  ;;  %1095 = vmatmul.msk.f32.vlgmr.msrb.gmra.mxu1 %vm70_vm2, %v1599_v38 }
 0x898   :  { %v696_v40 = vpop.f32.mrf.mxu0  ;;  %v716_v48 = vpop.f32.mrf.mxu1 }
 0x899   :  { %v721_v41 = vrot.slane %v696_v40, 6  ;;  %v722_v49 = vrot.slane %v716_v48, 6 }
 0x89b   :  { %v725_v47 = vadd.f32 %v721_v41, %v1523_v18  ;;  %v726_v51 = vadd.f32 %v722_v49, %v1526_v43  ;;  %v1049_v49 = vld [vmem:[%s1690_s2] sm:$0xff] }
 0x89d   :  { %v1096_v44 = vmul.f32 -1.442695, %v725_v47  ;;  %v1097_v6 = vmul.f32 -1.442695, %v726_v51 }
 0x89f   :  { %1175 = vpow2.f32 %v1096_v44 }
 0x8a5   :  { %v1176_v45 = vpop.eup %1175 }
 0x8a6   :  { %v730_v46 = vadd.f32 1.0, %v1176_v45 }
 0x8a8   :  { %1177 = vrcp.f32 %v730_v46  ;;  %v742_v54 = vand.u32 2147483648, %v730_v46  ;;  %v740_v56 = vand.u32 2147483647, %v730_v46  ;;  %vm736_vm9 = vweird.f32 %v730_v46 }
 0x8a9   :  { %1179 = vtanh.f32 %v726_v51 }
 0x8aa   :  { %v743_v58 = vor.u32 1.1754944e-38, %v742_v54  ;;  %vm741_vm11 = vcmp.eq.f32.partialorder %v740_v56, 8.507059e+37  ;;  %1181 = vpow2.f32 %v1097_v6 }
 0x8ae   :  { %v1178_v50 = vpop.eup %1177 }
 0x8af   :  { %v732_v52 = vmul.f32 %v1178_v50, %v730_v46  ;;  %vm737_vm8 = vweird.f32 %v1178_v50  ;;  %v1180_v62 = vpop.eup %1179 }
 0x8b0   :  { %vm738_vm10 = vmor %vm736_vm9, %vm737_vm8  ;;  %v1182_v7 = vpop.eup %1181 }
 0x8b1   :  { %v733_v53 = vsub.f32 1.0, %v732_v52  ;;  %v750_v8 = vadd.f32 1.0, %v1182_v7 }
 0x8b3   :  { %v734_v55 = vmul.f32 %v1178_v50, %v733_v53  ;;  %1183 = vrcp.f32 %v750_v8  ;;  %v762_v28 = vand.u32 2147483648, %v750_v8  ;;  %vm756_vm13 = vweird.f32 %v750_v8 }
 0x8b4   :  { %v760_v30 = vand.u32 2147483647, %v750_v8 }
 0x8b5   :  { %v735_v57 = vadd.f32 %v1178_v50, %v734_v55  ;;  %v763_v33 = vor.u32 1.1754944e-38, %v762_v28 }
 0x8b6   :  { %vm761_vm1 = vcmp.eq.f32.partialorder %v760_v30, 8.507059e+37 }
 0x8b7   :  { %v739_v61 = vsel %vm738_vm10, %v1178_v50, %v735_v57  ;;  %vm345_vm10 = vcmask 257026  }
 0x8b8   :  { %v744_v63 = vsel %vm741_vm11, %v743_v58, %v739_v61  ;;  %vm347_vm11 = vcmask 519426  }
 0x8b9   :  { %v770_v0 = vmul.f32 %v1180_v62, %v744_v63  ;;  %v769_v1 = vmul.f32 %v767_v59, %v744_v63  ;;  %v1184_v9 = vpop.eup %1183 }
 0x8ba   :  { %v752_v10 = vmul.f32 %v1184_v9, %v750_v8  ;;  %vm757_vm12 = vweird.f32 %v1184_v9 }
 0x8bb   :  { %772 = vrot.lane.b32.xlu2 %v770_v0, %s1217_s3  ;;  %vm758_vm14 = vmor %vm756_vm13, %vm757_vm12  ;;  %vm457_vm13 = vcmask 259076  }
 0x8bc   :  { %v753_v21 = vsub.f32 1.0, %v752_v10 }
 0x8be   :  { %v754_v22 = vmul.f32 %v1184_v9, %v753_v21 }
 0x8c0   :  { %v755_v27 = vadd.f32 %v1184_v9, %v754_v22 }
 0x8c2   :  { %v759_v31 = vsel %vm758_vm14, %v1184_v9, %v755_v27  ;;  %v1050_v9 = vld [vmem:[%s1690_s2 + $0x8] sm:$0xff]  ;;  %vm459_vm14 = vcmask 521476  }
 0x8c3   :  { %v764_v2 = vsel %vm761_vm1, %v763_v33, %v759_v31 }
 0x915   :  { %v773_v25 = vpop.permute.xlu2 %772 }
 0x916   :  { %v775_v24 = vadd.f32 %v773_v25, %v769_v1 }
 0x918   :  { %1185 = vtanh.f32 %v775_v24  ;;  %v877_v41 = vrot.slane %v775_v24, 6 }
 0x91e   :  { %v1186_v35 = vpop.eup %1185 }
 0x91f   :  { %v777_v3 = vmul.f32 %v1186_v35, %v764_v2 }
 0x921   :  { %v784_v4 = vrot.slane %v777_v3, 2 }
 0x923   :  { %785 = vrot.lane.b32.xlu0 %v784_v4, %s1217_s3 }
 0x995   :  { %v786_v5 = vpop.permute.xlu0 %785 }
 0x996   :  { %1098 = vmatmul.msk.f32.vlgmr.msra.gmra.mxu2 %vm70_vm2, %v786_v5  ;;  %1099 = vmatmul.msk.f32.vlgmr.msra.gmra.mxu3 %vm70_vm2, %v786_v5 }
 0xa19   :  { %v806_v11 = vpop.f32.mrf.mxu2  ;;  %v826_v19 = vpop.f32.mrf.mxu3 }
 0xa1a   :  { %v831_v15 = vrot.slane %v806_v11, 4  ;;  %v832_v20 = vrot.slane %v826_v19, 4 }
 0xa1c   :  { %v835_v16 = vadd.f32 %v831_v15, %v1523_v18  ;;  %v836_v23 = vadd.f32 %v832_v20, %v1526_v43 }
 0xa1e   :  { %v1100_v12 = vmul.f32 -1.442695, %v835_v16  ;;  %v1101_v50 = vmul.f32 -1.442695, %v836_v23 }
 0xa20   :  { %1187 = vpow2.f32 %v1100_v12 }
 0xa26   :  { %v1188_v17 = vpop.eup %1187 }
 0xa27   :  { %v840_v13 = vadd.f32 1.0, %v1188_v17 }
 0xa29   :  { %1189 = vrcp.f32 %v840_v13  ;;  %v852_v42 = vand.u32 2147483648, %v840_v13  ;;  %v850_v37 = vand.u32 2147483647, %v840_v13  ;;  %vm846_vm4 = vweird.f32 %v840_v13 }
 0xa2a   :  { %1191 = vtanh.f32 %v836_v23 }
 0xa2b   :  { %v853_v40 = vor.u32 1.1754944e-38, %v852_v42  ;;  %vm851_vm6 = vcmp.eq.f32.partialorder %v850_v37, 8.507059e+37  ;;  %1193 = vpow2.f32 %v1101_v50  ;;  %v1013_v42 = vld [vmem:[%s1691_s5 + $0x38] sm:$0xff]  ;;  %v1011_v37 = vld [vmem:[%s1691_s5 + $0x28] sm:$0xff] }
 0xa2c   :  { %1032 = vmatpush.msrb.mxu2 %v1013_v42 }
 0xa2f   :  { %v1190_v14 = vpop.eup %1189 }
 0xa30   :  { %v842_v26 = vmul.f32 %v1190_v14, %v840_v13  ;;  %vm847_vm3 = vweird.f32 %v1190_v14  ;;  %v1192_v44 = vpop.eup %1191 }
 0xa31   :  { %vm848_vm5 = vmor %vm846_vm4, %vm847_vm3  ;;  %v1194_v51 = vpop.eup %1193 }
 0xa32   :  { %v843_v29 = vsub.f32 1.0, %v842_v26  ;;  %v860_v52 = vadd.f32 1.0, %v1194_v51 }
 0xa34   :  { %v844_v36 = vmul.f32 %v1190_v14, %v843_v29  ;;  %1195 = vrcp.f32 %v860_v52  ;;  %v872_v59 = vand.u32 2147483648, %v860_v52  ;;  %vm866_vm8 = vweird.f32 %v860_v52 }
 0xa35   :  { %v870_v61 = vand.u32 2147483647, %v860_v52 }
 0xa36   :  { %v845_v39 = vadd.f32 %v1190_v14, %v844_v36  ;;  %v873_v63 = vor.u32 1.1754944e-38, %v872_v59  ;;  %v1012_v36 = vld [vmem:[%s1691_s5 + $0x30] sm:$0xff] }
 0xa37   :  { %vm871_vm12 = vcmp.eq.f32.partialorder %v870_v61, 8.507059e+37  ;;  %1033 = vmatpush.msrb.mxu2 %v1012_v36 }
 0xa38   :  { %v849_v47 = vsel %vm848_vm5, %v1190_v14, %v845_v39 }
 0xa39   :  { %v854_v45 = vsel %vm851_vm6, %v853_v40, %v849_v47  ;;  %1034 = vmatpush.msrb.mxu2 %v1011_v37 }
 0xa3a   :  { %v880_v46 = vmul.f32 %v1192_v44, %v854_v45  ;;  %v879_v48 = vmul.f32 %v877_v41, %v854_v45  ;;  %v1196_v53 = vpop.eup %1195 }
 0xa3b   :  { %v862_v54 = vmul.f32 %v1196_v53, %v860_v52  ;;  %vm867_vm7 = vweird.f32 %v1196_v53 }
 0xa3c   :  { %882 = vrot.lane.b32.xlu1 %v880_v46, %s1217_s3  ;;  %vm868_vm9 = vmor %vm866_vm8, %vm867_vm7 }
 0xa3d   :  { %v863_v55 = vsub.f32 1.0, %v862_v54 }
 0xa3f   :  { %v864_v56 = vmul.f32 %v1196_v53, %v863_v55 }
 0xa44   :  { %342 = vrot.lane.b32.xlu1 %v1534_v34, %s1217_s3  ;;  %v865_v34 = vadd.f32 %v1196_v53, %v864_v56  ;;  %v1009_v56 = vld [vmem:[%s1691_s5 + $0x18] sm:$0xff] }
 0xa46   :  { %v869_v62 = vsel %vm868_vm9, %v1196_v53, %v865_v34  ;;  %vm569_vm9 = vcmask 261126  }
 0xa47   :  { %v874_v6 = vsel %vm871_vm12, %v873_v63, %v869_v62  ;;  %v1114_v62 = vld [vmem:[%s1692_s6] ss:$0 sm:$0xff] }
 0xa4c   :  { %779 = vrot.lane.b32.xlu1 %v777_v3, %s1217_s3 }
 0xa54   :  { %1053 = vperm.xlu1 %1112, %v1049_v49  }
 0xaae   :  { %v883_v57 = vpop.permute.xlu1 %882 }
 0xaaf   :  { %v1620_v58 = vadd.f32 %v883_v57, %v879_v48  ;;  %v1008_v57 = vld [vmem:[%s1691_s5 + $0x10] sm:$0xff] }
 0xab1   :  { %1197 = vtanh.f32 %v1620_v58  ;;  %v987_v17 = vrot.slane %v1620_v58, 6  ;;  %v1007_v58 = vld [vmem:[%s1691_s5 + $0x8] sm:$0xff] }
 0xab6   :  { %v343_v0 = vpop.permute.xlu1 %342 }
 0xab7   :  { %v1198_v1 = vpop.eup %1197  ;;  %346 = vst.msk [vmem:[#allocation2] sm:$0xc] %vm345_vm10, %v343_v0 }
 0xab8   :  { %348 = vst.msk [vmem:[#allocation2 + $0xa] sm:$0xc] %vm347_vm11, %v343_v0  ;;  %v887_v7 = vmul.f32 %v1198_v1, %v874_v6 }
 0xaba   :  { %v894_v8 = vrot.slane %v887_v7, 4 }
 0xabc   :  { %895 = vrot.lane.b32.xlu2 %v894_v8, %s1217_s3 }
 0xabe   :  { %v780_v22 = vpop.permute.xlu1 %779 }
 0xac4   :  { %454 = vrot.lane.b32.xlu2 %v1563_v32, %s1217_s3 }
 0xacc   :  { %889 = vrot.lane.b32.xlu2 %v887_v7, %s1217_s3  ;;  %v1054_v7 = vpop.permute.xlu1 %1053 }
 0xad4   :  { %1058 = vperm.xlu2 %1113, %v1050_v9  }
 0xb16   :  { %v896_v10 = vpop.permute.xlu2 %895 }
 0xb17   :  { %1102 = vmatmul.msk.f32.vlgmr.msra.gmra.mxu0 %vm70_vm2, %v896_v10  ;;  %1103 = vmatmul.msk.f32.vlgmr.msra.gmra.mxu1 %vm70_vm2, %v896_v10 }
 0xb1e   :  { %v455_v21 = vpop.permute.xlu2 %454 }
 0xb1f   :  { %458 = vst.msk [vmem:[#allocation2] sm:$0x30] %vm457_vm13, %v455_v21 }
 0xb20   :  { %460 = vst.msk [vmem:[#allocation2 + $0x6] sm:$0x30] %vm459_vm14, %v455_v21 }
 0xb21   :  { %782 = vst.msk [vmem:[#allocation2 + $0x8] sm:$0xc] %vm345_vm10, %v780_v22  ;;  %vm571_vm10 = vcmask 523526  }
 0xb22   :  { %783 = vst.msk [vmem:[#allocation2 + $0x2] sm:$0xc] %vm347_vm11, %v780_v22 }
 0xb26   :  { %v890_v32 = vpop.permute.xlu2 %889 }
 0xb27   :  { %892 = vst.msk [vmem:[#allocation2 + $0x8] sm:$0x30] %vm457_vm13, %v890_v32 }
 0xb28   :  { %893 = vst.msk [vmem:[#allocation2 - $0x2] sm:$0x30] %vm459_vm14, %v890_v32 }
 0xb2e   :  { %v1059_v21 = vpop.permute.xlu2 %1058 }
 0xb94   :  { %v916_v25 = vpop.f32.mrf.mxu0  ;;  %v936_v33 = vpop.f32.mrf.mxu1 }
 0xb95   :  { %v941_v24 = vrot.slane %v916_v25, 2  ;;  %v942_v35 = vrot.slane %v936_v33, 2 }
 0xb97   :  { %v945_v27 = vadd.f32 %v941_v24, %v1523_v18  ;;  %v946_v3 = vadd.f32 %v942_v35, %v1526_v43 }
 0xb99   :  { %v1104_v28 = vmul.f32 -1.442695, %v945_v27  ;;  %v1105_v43 = vmul.f32 -1.442695, %v946_v3 }
 0xb9b   :  { %1199 = vpow2.f32 %v1104_v28 }
 0xba1   :  { %v1200_v30 = vpop.eup %1199 }
 0xba2   :  { %v950_v31 = vadd.f32 1.0, %v1200_v30 }
 0xba4   :  { %1201 = vrcp.f32 %v950_v31  ;;  %v962_v11 = vand.u32 2147483648, %v950_v31  ;;  %v960_v16 = vand.u32 2147483647, %v950_v31  ;;  %vm956_vm3 = vweird.f32 %v950_v31 }
 0xba5   :  { %1203 = vtanh.f32 %v946_v3 }
 0xba6   :  { %v963_v18 = vor.u32 1.1754944e-38, %v962_v11  ;;  %vm961_vm5 = vcmp.eq.f32.partialorder %v960_v16, 8.507059e+37  ;;  %1205 = vpow2.f32 %v1105_v43 }
 0xbaa   :  { %v1202_v2 = vpop.eup %1201 }
 0xbab   :  { %v952_v4 = vmul.f32 %v1202_v2, %v950_v31  ;;  %vm957_vm1 = vweird.f32 %v1202_v2  ;;  %v1204_v19 = vpop.eup %1203 }
 0xbac   :  { %vm958_vm4 = vmor %vm956_vm3, %vm957_vm1  ;;  %v1206_v26 = vpop.eup %1205 }
 0xbad   :  { %v953_v5 = vsub.f32 1.0, %v952_v4  ;;  %v970_v29 = vadd.f32 1.0, %v1206_v26 }
 0xbaf   :  { %v954_v15 = vmul.f32 %v1202_v2, %v953_v5  ;;  %1207 = vrcp.f32 %v970_v29  ;;  %v982_v48 = vand.u32 2147483648, %v970_v29  ;;  %vm976_vm7 = vweird.f32 %v970_v29 }
 0xbb0   :  { %v980_v49 = vand.u32 2147483647, %v970_v29 }
 0xbb1   :  { %v955_v12 = vadd.f32 %v1202_v2, %v954_v15  ;;  %v983_v51 = vor.u32 1.1754944e-38, %v982_v48 }
 0xbb2   :  { %vm981_vm11 = vcmp.eq.f32.partialorder %v980_v49, 8.507059e+37 }
 0xbb3   :  { %v959_v13 = vsel %vm958_vm4, %v1202_v2, %v955_v12 }
 0xbb4   :  { %v964_v20 = vsel %vm961_vm5, %v963_v18, %v959_v13 }
 0xbb5   :  { %v990_v14 = vmul.f32 %v1204_v19, %v964_v20  ;;  %v989_v23 = vmul.f32 %v987_v17, %v964_v20  ;;  %v1208_v39 = vpop.eup %1207 }
 0xbb6   :  { %v972_v40 = vmul.f32 %v1208_v39, %v970_v29  ;;  %vm977_vm6 = vweird.f32 %v1208_v39 }
 0xbb7   :  { %992 = vrot.lane.b32.xlu0 %v990_v14, %s1217_s3  ;;  %vm978_vm8 = vmor %vm976_vm7, %vm977_vm6 }
 0xbb8   :  { %v973_v41 = vsub.f32 1.0, %v972_v40 }
 0xbba   :  { %v974_v47 = vmul.f32 %v1208_v39, %v973_v41 }
 0xbbc   :  { %v975_v46 = vadd.f32 %v1208_v39, %v974_v47 }
 0xbbe   :  { %v979_v50 = vsel %vm978_vm8, %v1208_v39, %v975_v46 }
 0xbbf   :  { %566 = vrot.lane.b32.xlu0 %v1589_v60, %s1217_s3  ;;  %v1010_v60 = vld [vmem:[%s1691_s5 + $0x20] sm:$0xff]  ;;  %v984_v54 = vsel %vm981_vm11, %v983_v51, %v979_v50 }
 0xbc0   :  { %1035 = vmatpush.msrb.mxu2 %v1010_v60 }
 0xbc2   :  { %1036 = vmatpush.msrb.mxu2 %v1009_v56 }
 0xbc4   :  { %1037 = vmatpush.msrb.mxu2 %v1008_v57 }
 0xbc6   :  { %1038 = vmatpush.msrb.mxu2 %v1007_v58 }
 0xc29   :  { %v993_v44 = vpop.permute.xlu0 %992 }
 0xc2a   :  { %v995_v45 = vadd.f32 %v993_v44, %v989_v23 }
 0xc2c   :  { %1209 = vtanh.f32 %v995_v45 }
 0xc31   :  { %v567_v52 = vpop.permute.xlu0 %566 }
 0xc32   :  { %v1210_v53 = vpop.eup %1209  ;;  %570 = vst.msk [vmem:[#allocation2] sm:$0xc0] %vm569_vm9, %v567_v52 }
 0xc33   :  { %572 = vst.msk [vmem:[#allocation2 + $0x2] sm:$0xc0] %vm571_vm10, %v567_v52  ;;  %v997_v55 = vmul.f32 %v1210_v53, %v984_v54 }
 0xc34   :  { %675 = vst.msk [vmem:[#allocation2 + $0x8] sm:$0x3] %vm236_vm15, %v1599_v38  ;;  %vm1063_vm15 = vcmask 261120  }
 0xc35   :  { %676 = vst.msk [vmem:[#allocation2 + $0x6] sm:$0x3] %vm238_vm0, %v1599_v38  ;;  %999 = vrot.lane.b32.xlu0 %v997_v55, %s1217_s3  ;;  %v1006_v38 = vld [vmem:[%s1691_s5] sm:$0xff] }
 0xc36   :  { %1039 = vmatpush.msrb.mxu2 %v1006_v38 }
 0xca7   :  { %v1000_v34 = vpop.permute.xlu0 %999 }
 0xca8   :  { %1002 = vst.msk [vmem:[#allocation2 + $0x8] sm:$0xc0] %vm569_vm9, %v1000_v34 }
 0xca9   :  { %1003 = vst.msk [vmem:[#allocation2 - $0x6] sm:$0xc0] %vm571_vm10, %v1000_v34 }
 0xcaf   :  { %v1005_v61 = vld [vmem:[#allocation2 + $0x8] sm:$0xff] }
 0xcb0   :  { %v1004_v59 = vld [vmem:[#allocation2] sm:$0xff] }
 0xcb1   :  { %1106 = vmatmul.msk.f32.vlgmr.msrb.gmra.mxu2 %vm70_vm2, %v1004_v59 }
 0xcb9   :  { %1107 = vmatmul.msk.f32.gmra.mxu2 %vm70_vm2, %v1005_v61 }
 0xd34   :  { %v1041_v63 = vpop.f32.mrf.mxu2 }
 0xd35   :  { %v1042_v0 = vadd.f32 %v1114_v62, %v1041_v63 }
 0xd37   :  { %1211 = vtanh.f32 %v1042_v0 }
 0xd3c   :  { %v1044_v1 = vpop.f32.mrf.mxu2 }
 0xd3d   :  { %v1212_v6 = vpop.eup %1211  ;;  %v1045_v8 = vadd.f32 %v1114_v62, %v1044_v1 }
 0xd3e   :  { %v1061_v9 = vmul.f32 %v1212_v6, %v1054_v7 }
 0xd3f   :  { %1213 = vtanh.f32 %v1045_v8 }
 0xd40   :  { %1064 = vst.msk [vmem:[%s1693_s7] sm:$0xff] %vm1063_vm15, %v1061_v9 }
 0xd45   :  { %v1214_v10 = vpop.eup %1213 }
 0xd46   :  { %v1062_v22 = vmul.f32 %v1214_v10, %v1059_v21 }
 0xd48   :  { %1065 = vst.msk [vmem:[%s1693_s7 + $0x8] sm:$0xff] %vm1063_vm15, %v1062_v22 }

</bundles_post_ra>
